<compile_context>
chip_gen: v7x
topology: tpu7x:2x2x1
jax: 0.10.0
libtpu: 0.0.40
codegen_flags: <defaults>
</compile_context>

<pallas_src>
import functools

import jax
import jax.numpy as jnp
from jax.experimental import pallas as pl
from jax.experimental.pallas import tpu as pltpu


def _round_up(x, m):
    return ((x + m - 1) // m) * m


# ----------------------------- Pallas kernel -------------------------------

def _generator_mlp_kernel(x_ref,
                          w1_ref, b1_ref,
                          w2_ref, b2_ref,
                          w3_ref, b3_ref,
                          w4_ref, b4_ref,
                          o_ref, h3_ref):
    """Fused MLP: sigmoid(relu(relu(relu(x@W1+b1)@W2+b2)@W3+b3)@W4+b4).

    Grid = (batch tiles, N-split groups, N tiles per group).  Layers 1-3 run
    once per (batch tile, group) at the group's first N step (j == 0) and the
    result is kept in the persistent bf16 h3 VMEM scratch; every j-step then
    only multiplies h3 against one N-tile of W4.  Recomputing h3 per group is
    redundant on a single core but keeps the scratch valid when the group
    axis is sharded across TensorCores (v7x).
    """
    @pl.when(pl.program_id(2) == 0)
    def _():
        h = jnp.dot(x_ref[...], w1_ref[...],
                    preferred_element_type=jnp.float32) + b1_ref[...]
        h = jnp.maximum(h, 0.0).astype(jnp.bfloat16)
        h = jnp.dot(h, w2_ref[...],
                    preferred_element_type=jnp.float32) + b2_ref[...]
        h = jnp.maximum(h, 0.0).astype(jnp.bfloat16)
        h = jnp.dot(h, w3_ref[...],
                    preferred_element_type=jnp.float32) + b3_ref[...]
        h3_ref[...] = jnp.maximum(h, 0.0).astype(jnp.bfloat16)

    logits = jnp.dot(h3_ref[...], w4_ref[...],
                     preferred_element_type=jnp.float32) + b4_ref[...]
    # sigmoid(x) = 1 / (1 + exp(-x)); approx reciprocal rides the EUP slot.
    probs = pl.reciprocal(1.0 + jnp.exp(-logits), approx=True)
    o_ref[...] = probs.astype(o_ref.dtype)


def _run_mlp(x, w1, b1, w2, b2, w3, b3, w4, b4, out_dtype=jnp.float32):
    """x: [B, D_in] (any float dtype).  Weights bf16, biases f32 (1, N).
    w4/b4 already padded so their N is a multiple of 512.
    Returns [B, Np] in out_dtype (caller slices the real item_count)."""
    B, D_in = x.shape
    H3, Np = w4.shape                       # (1024, padded item_count)

    # ---- batch tiling: multiples of 16 (bf16 sublane packing), tile <= 512.
    # Larger batch tiles mean fewer full passes over the streamed w4 weights.
    if B <= 512:
        tb = max(16, _round_up(B, 16))
        Bp = tb
    else:
        tb = 512
        Bp = _round_up(B, tb)
    nb = Bp // tb

    # ---- layer-4 N tiling (Np is a multiple of 512); target 2048 so the
    # per-step w4 DMA (~4 MiB bf16) dwarfs the fixed per-grid-step overhead.
    if Np % 2048 == 0:
        tn = 2048
    elif Np % 1024 == 0:
        tn = 1024
    else:
        tn = 512
    tn = min(tn, Np)
    nn = Np // tn

    # ---- split the N tiles into 2 groups when possible so the group axis can
    # be sharded across the two v7x TensorCores even when nb == 1.
    nc = 2 if (nn >= 2 and nn % 2 == 0) else 1
    nnj = nn // nc

    x_bf = x.astype(jnp.bfloat16)
    if Bp != B:
        x_bf = jnp.zeros((Bp, D_in), jnp.bfloat16).at[:B].set(x_bf)

    # NOTE: w1..b3 and x are invariant along the inner axes; they could be
    # single-buffered (pipeline_mode=pl.Buffered(1)) to save ~1.3 MiB VMEM,
    # but the budget below already has ample headroom on all generations.
    out = pl.pallas_call(
        _generator_mlp_kernel,
        out_shape=jax.ShapeDtypeStruct((Bp, Np), out_dtype),
        grid=(nb, nc, nnj),
        in_specs=[
            pl.BlockSpec((tb, D_in), lambda i, c, j: (i, 0)),
            pl.BlockSpec(w1.shape, lambda i, c, j: (0, 0)),
            pl.BlockSpec(b1.shape, lambda i, c, j: (0, 0)),
            pl.BlockSpec(w2.shape, lambda i, c, j: (0, 0)),
            pl.BlockSpec(b2.shape, lambda i, c, j: (0, 0)),
            pl.BlockSpec(w3.shape, lambda i, c, j: (0, 0)),
            pl.BlockSpec(b3.shape, lambda i, c, j: (0, 0)),
            pl.BlockSpec((H3, tn), lambda i, c, j: (0, c * nnj + j)),
            pl.BlockSpec((1, tn), lambda i, c, j: (0, c * nnj + j)),
        ],
        out_specs=pl.BlockSpec((tb, tn), lambda i, c, j: (i, c * nnj + j)),
        scratch_shapes=[pltpu.VMEM((tb, H3), jnp.bfloat16)],
        compiler_params=pltpu.CompilerParams(
            dimension_semantics=("parallel", "parallel", "arbitrary"),
            vmem_limit_bytes=48 * 1024 * 1024),
    )(x_bf, w1, b1, w2, b2, w3, b3, w4, b4)
    return out[:B]


# ------------------------------ Generator ----------------------------------

def init_generator_params(key, num_inputs, input_size, item_count,
                          c_embedding_size, review_embedding_size,
                          use_reviews=True):
    """Deterministic parameter init (PyTorch-style uniform fan-in bounds).
    Weights stored as [in_features, out_features] (transposed vs nn.Linear)."""
    if use_reviews:
        input_dim = input_size + c_embedding_size + review_embedding_size
    else:
        input_dim = input_size + c_embedding_size

    dims = [input_dim, 256, 512, 1024, item_count]
    keys = jax.random.split(key, 2 * (len(dims) - 1) + 1)

    params = {"embedding": jax.random.normal(
        keys[0], (num_inputs, c_embedding_size), jnp.float32)}

    for li in range(len(dims) - 1):
        fan_in, fan_out = dims[li], dims[li + 1]
        bound = 1.0 / jnp.sqrt(fan_in)
        params[f"w{li + 1}"] = jax.random.uniform(
            keys[1 + 2 * li], (fan_in, fan_out), jnp.float32, -bound, bound)
        params[f"b{li + 1}"] = jax.random.uniform(
            keys[2 + 2 * li], (fan_out,), jnp.float32, -bound, bound)
    return params


def prepare_generator_params(params, item_count):
    """One-time prep: bf16 weights, (1, N) f32 biases, pad layer 4's output
    dimension to a multiple of 512 (lane-dense stores + big N tiles)."""
    item_padded = max(512, _round_up(item_count, 512))

    def wcast(w):
        return w.astype(jnp.bfloat16)

    def brow(b):
        return b.reshape(1, -1).astype(jnp.float32)

    w4 = wcast(params["w4"])
    w4p = jnp.zeros((w4.shape[0], item_padded), jnp.bfloat16)
    w4p = w4p.at[:, :item_count].set(w4)
    b4p = jnp.zeros((1, item_padded), jnp.float32)
    b4p = b4p.at[:, :item_count].set(params["b4"].astype(jnp.float32))

    return {
        "embedding": params["embedding"],
        "w1": wcast(params["w1"]), "b1": brow(params["b1"]),
        "w2": wcast(params["w2"]), "b2": brow(params["b2"]),
        "w3": wcast(params["w3"]), "b3": brow(params["b3"]),
        "w4": w4p, "b4": b4p,
    }


@functools.partial(jax.jit,
                   static_argnames=("item_count", "use_reviews", "out_dtype"))
def generator_forward(prep, noise_vector, input_index, review_embedding,
                      item_count, use_reviews=True, out_dtype=jnp.float32):
    # Embedding lookup + concat are glue (cheap, data-dependent gather).
    embedding_vector = prep["embedding"][input_index]            # [B, c_emb]
    if use_reviews:
        g_input = jnp.concatenate(
            [noise_vector, embedding_vector, review_embedding], axis=1)
    else:
        g_input = jnp.concatenate([noise_vector, embedding_vector], axis=1)

    out = _run_mlp(g_input,
                   prep["w1"], prep["b1"],
                   prep["w2"], prep["b2"],
                   prep["w3"], prep["b3"],
                   prep["w4"], prep["b4"],
                   out_dtype=out_dtype)
    return out[:, :item_count]


# --------------------------------- main -------------------------------------

if __name__ == "__main__":
    # Small, module-consistent shapes.
    batch = 2
    num_inputs = 10            # embedding table rows
    input_size = 16            # noise vector size
    item_count = 32            # generator output size
    c_embedding_size = 8
    review_embedding_size = 8
    use_reviews = True

    key = jax.random.PRNGKey(0)
    k_param, k_noise, k_idx, k_rev = jax.random.split(key, 4)

    params = init_generator_params(
        k_param, num_inputs, input_size, item_count,
        c_embedding_size, review_embedding_size, use_reviews)
    prep = prepare_generator_params(params, item_count)

    noise_vector = jax.random.normal(k_noise, (batch, input_size), jnp.float32)
    input_index = jax.random.randint(k_idx, (batch,), 0, num_inputs, jnp.int32)
    review_embedding = jax.random.normal(
        k_rev, (batch, review_embedding_size), jnp.float32)

    out = generator_forward(prep, noise_vector, input_index, review_embedding,
                            item_count=item_count, use_reviews=use_reviews)
    out = jax.block_until_ready(out)
    assert out.shape == (batch, item_count)

    # Reference with the same bf16 quantization of inputs/weights and f32
    # accumulation (matches the kernel's arithmetic up to accumulation order
    # and the approximate EUP reciprocal in the sigmoid).
    emb = params["embedding"][input_index]
    x = jnp.concatenate([noise_vector, emb, review_embedding], axis=1)
    xq = x.astype(jnp.bfloat16).astype(jnp.float32)

    def q(w):
        return w.astype(jnp.bfloat16).astype(jnp.float32)

    h = jnp.maximum(xq @ q(params["w1"]) + params["b1"], 0.0)
    h = h.astype(jnp.bfloat16).astype(jnp.float32)
    h = jnp.maximum(h @ q(params["w2"]) + params["b2"], 0.0)
    h = h.astype(jnp.bfloat16).astype(jnp.float32)
    h = jnp.maximum(h @ q(params["w3"]) + params["b3"], 0.0)
    h = h.astype(jnp.bfloat16).astype(jnp.float32)
    ref = jax.nn.sigmoid(h @ q(params["w4"]) + params["b4"])

    assert jnp.allclose(out, ref, atol=1e-2, rtol=1e-2), (
        float(jnp.max(jnp.abs(out - ref))))

    # Loose sanity check against the full-precision f32 forward.
    hf = jnp.maximum(x @ params["w1"] + params["b1"], 0.0)
    hf = jnp.maximum(hf @ params["w2"] + params["b2"], 0.0)
    hf = jnp.maximum(hf @ params["w3"] + params["b3"], 0.0)
    ref_f32 = jax.nn.sigmoid(hf @ params["w4"] + params["b4"])
    assert jnp.allclose(out, ref_f32, atol=3e-2, rtol=3e-2)

    print("KERNEL_OK")
</pallas_src>

<mosaic_0001>
module attributes {stable_mosaic.version = 11 : i64} {
  func.func @_generator_mlp_kernel(%arg0: i32, %arg1: i32, %arg2: i32, %arg3: memref<16x32xbf16, #tpu.memory_space<vmem>>, %arg4: memref<32x256xbf16, #tpu.memory_space<vmem>>, %arg5: memref<1x256xf32, #tpu.memory_space<vmem>>, %arg6: memref<256x512xbf16, #tpu.memory_space<vmem>>, %arg7: memref<1x512xf32, #tpu.memory_space<vmem>>, %arg8: memref<512x1024xbf16, #tpu.memory_space<vmem>>, %arg9: memref<1x1024xf32, #tpu.memory_space<vmem>>, %arg10: memref<1024x512xbf16, #tpu.memory_space<vmem>>, %arg11: memref<1x512xf32, #tpu.memory_space<vmem>>, %arg12: memref<16x512xf32, #tpu.memory_space<vmem>>, %arg13: memref<16x1024xbf16, #tpu.memory_space<vmem>>) attributes {dimension_semantics = [#tpu.dimension_semantics<parallel>, #tpu.dimension_semantics<parallel>, #tpu.dimension_semantics<arbitrary>], iteration_bounds = array<i64: 1, 1, 1>, scalar_prefetch = 0 : i64, scratch_operands = 1 : i64, tpu.core_type = #tpu.core_type<tc>, window_params = [{transform_indices = @transform_0, window_bounds = array<i64: 16, 32>}, {pipeline_mode = #tpu.pipeline_mode<synchronous>, transform_indices = @transform_1, window_bounds = array<i64: 32, 256>}, {pipeline_mode = #tpu.pipeline_mode<synchronous>, transform_indices = @transform_2, window_bounds = array<i64: 1, 256>}, {pipeline_mode = #tpu.pipeline_mode<synchronous>, transform_indices = @transform_3, window_bounds = array<i64: 256, 512>}, {pipeline_mode = #tpu.pipeline_mode<synchronous>, transform_indices = @transform_4, window_bounds = array<i64: 1, 512>}, {pipeline_mode = #tpu.pipeline_mode<synchronous>, transform_indices = @transform_5, window_bounds = array<i64: 512, 1024>}, {pipeline_mode = #tpu.pipeline_mode<synchronous>, transform_indices = @transform_6, window_bounds = array<i64: 1, 1024>}, {transform_indices = @transform_7, window_bounds = array<i64: 1024, 512>}, {transform_indices = @transform_8, window_bounds = array<i64: 1, 512>}, {transform_indices = @transform_9, window_bounds = array<i64: 16, 512>}]} {
    %c0_i32 = arith.constant 0 : i32
    %0 = arith.cmpi eq, %arg2, %c0_i32 : i32
    %1 = arith.extui %0 : i1 to i32
    %c0_i32_0 = arith.constant 0 : i32
    %2 = arith.cmpi ne, %1, %c0_i32_0 : i32
    scf.if %2 {
      %c0_10 = arith.constant 0 : index
      %c0_11 = arith.constant 0 : index
      %16 = vector.load %arg3[%c0_10, %c0_11] : memref<16x32xbf16, #tpu.memory_space<vmem>>, vector<16x32xbf16>
      %c0_12 = arith.constant 0 : index
      %c0_13 = arith.constant 0 : index
      %17 = vector.load %arg4[%c0_12, %c0_13] : memref<32x256xbf16, #tpu.memory_space<vmem>>, vector<32x256xbf16>
      %cst_14 = arith.constant dense<0.000000e+00> : vector<16x256xf32>
      %18 = tpu.matmul %16, %17, %cst_14 {dimension_numbers = #tpu.dot_dimension_numbers<[1], [0], [0], [1], [0, 0, 1, 1], [], []>} : vector<16x32xbf16>, vector<32x256xbf16>, vector<16x256xf32> -> vector<16x256xf32>
      %c0_15 = arith.constant 0 : index
      %c0_16 = arith.constant 0 : index
      %19 = vector.load %arg5[%c0_15, %c0_16] : memref<1x256xf32, #tpu.memory_space<vmem>>, vector<1x256xf32>
      %20 = vector.broadcast %19 : vector<1x256xf32> to vector<16x256xf32>
      %21 = arith.addf %18, %20 : vector<16x256xf32>
      %cst_17 = arith.constant 0.000000e+00 : f32
      %22 = vector.broadcast %cst_17 : f32 to vector<16x256xf32>
      %23 = arith.maximumf %21, %22 : vector<16x256xf32>
      %24 = arith.truncf %23 : vector<16x256xf32> to vector<16x256xbf16>
      %c0_18 = arith.constant 0 : index
      %c0_19 = arith.constant 0 : index
      %25 = vector.load %arg6[%c0_18, %c0_19] : memref<256x512xbf16, #tpu.memory_space<vmem>>, vector<256x512xbf16>
      %cst_20 = arith.constant dense<0.000000e+00> : vector<16x512xf32>
      %26 = tpu.matmul %24, %25, %cst_20 {dimension_numbers = #tpu.dot_dimension_numbers<[1], [0], [0], [1], [0, 0, 1, 1], [], []>} : vector<16x256xbf16>, vector<256x512xbf16>, vector<16x512xf32> -> vector<16x512xf32>
      %c0_21 = arith.constant 0 : index
      %c0_22 = arith.constant 0 : index
      %27 = vector.load %arg7[%c0_21, %c0_22] : memref<1x512xf32, #tpu.memory_space<vmem>>, vector<1x512xf32>
      %28 = vector.broadcast %27 : vector<1x512xf32> to vector<16x512xf32>
      %29 = arith.addf %26, %28 : vector<16x512xf32>
      %cst_23 = arith.constant 0.000000e+00 : f32
      %30 = vector.broadcast %cst_23 : f32 to vector<16x512xf32>
      %31 = arith.maximumf %29, %30 : vector<16x512xf32>
      %32 = arith.truncf %31 : vector<16x512xf32> to vector<16x512xbf16>
      %c0_24 = arith.constant 0 : index
      %c0_25 = arith.constant 0 : index
      %33 = vector.load %arg8[%c0_24, %c0_25] : memref<512x1024xbf16, #tpu.memory_space<vmem>>, vector<512x1024xbf16>
      %cst_26 = arith.constant dense<0.000000e+00> : vector<16x1024xf32>
      %34 = tpu.matmul %32, %33, %cst_26 {dimension_numbers = #tpu.dot_dimension_numbers<[1], [0], [0], [1], [0, 0, 1, 1], [], []>} : vector<16x512xbf16>, vector<512x1024xbf16>, vector<16x1024xf32> -> vector<16x1024xf32>
      %c0_27 = arith.constant 0 : index
      %c0_28 = arith.constant 0 : index
      %35 = vector.load %arg9[%c0_27, %c0_28] : memref<1x1024xf32, #tpu.memory_space<vmem>>, vector<1x1024xf32>
      %36 = vector.broadcast %35 : vector<1x1024xf32> to vector<16x1024xf32>
      %37 = arith.addf %34, %36 : vector<16x1024xf32>
      %cst_29 = arith.constant 0.000000e+00 : f32
      %38 = vector.broadcast %cst_29 : f32 to vector<16x1024xf32>
      %39 = arith.maximumf %37, %38 : vector<16x1024xf32>
      %40 = arith.truncf %39 : vector<16x1024xf32> to vector<16x1024xbf16>
      %c0_30 = arith.constant 0 : index
      %c0_31 = arith.constant 0 : index
      %41 = vector.load %arg13[%c0_30, %c0_31] : memref<16x1024xbf16, #tpu.memory_space<vmem>>, vector<16x1024xbf16>
      tpu.vector_store %arg13[%c0_30, %c0_31], %40 {strides = array<i32>} : memref<16x1024xbf16, #tpu.memory_space<vmem>>, vector<16x1024xbf16>,
    } else {
    }
    %c0 = arith.constant 0 : index
    %c0_1 = arith.constant 0 : index
    %3 = vector.load %arg13[%c0, %c0_1] : memref<16x1024xbf16, #tpu.memory_space<vmem>>, vector<16x1024xbf16>
    %c0_2 = arith.constant 0 : index
    %c0_3 = arith.constant 0 : index
    %4 = vector.load %arg10[%c0_2, %c0_3] : memref<1024x512xbf16, #tpu.memory_space<vmem>>, vector<1024x512xbf16>
    %cst = arith.constant dense<0.000000e+00> : vector<16x512xf32>
    %5 = tpu.matmul %3, %4, %cst {dimension_numbers = #tpu.dot_dimension_numbers<[1], [0], [0], [1], [0, 0, 1, 1], [], []>} : vector<16x1024xbf16>, vector<1024x512xbf16>, vector<16x512xf32> -> vector<16x512xf32>
    %c0_4 = arith.constant 0 : index
    %c0_5 = arith.constant 0 : index
    %6 = vector.load %arg11[%c0_4, %c0_5] : memref<1x512xf32, #tpu.memory_space<vmem>>, vector<1x512xf32>
    %7 = vector.broadcast %6 : vector<1x512xf32> to vector<16x512xf32>
    %8 = arith.addf %5, %7 : vector<16x512xf32>
    %cst_6 = arith.constant 0.000000e+00 : f32
    %9 = vector.broadcast %cst_6 : f32 to vector<16x512xf32>
    %10 = arith.subf %9, %8 : vector<16x512xf32>
    %11 = math.exp %10 : vector<16x512xf32>
    %cst_7 = arith.constant 1.000000e+00 : f32
    %12 = vector.broadcast %cst_7 : f32 to vector<16x512xf32>
    %13 = arith.addf %12, %11 : vector<16x512xf32>
    %14 = tpu.reciprocal %13 {approx = true} : vector<16x512xf32> -> vector<16x512xf32>
    %c0_8 = arith.constant 0 : index
    %c0_9 = arith.constant 0 : index
    %15 = vector.load %arg12[%c0_8, %c0_9] : memref<16x512xf32, #tpu.memory_space<vmem>>, vector<16x512xf32>
    tpu.vector_store %arg12[%c0_8, %c0_9], %14 {strides = array<i32>} : memref<16x512xf32, #tpu.memory_space<vmem>>, vector<16x512xf32>,
    return
  }
  func.func @transform_0(%arg0: i32, %arg1: i32, %arg2: i32) -> (i32, i32) {
    %c0_i32 = arith.constant 0 : i32
    %c0_i32_0 = arith.constant 0 : i32
    return %arg0, %c0_i32 : i32, i32
  }
  func.func @transform_1(%arg0: i32, %arg1: i32, %arg2: i32) -> (i32, i32) {
    %c0_i32 = arith.constant 0 : i32
    %c0_i32_0 = arith.constant 0 : i32
    %c0_i32_1 = arith.constant 0 : i32
    return %c0_i32, %c0_i32_0 : i32, i32
  }
  func.func @transform_2(%arg0: i32, %arg1: i32, %arg2: i32) -> (i32, i32) {
    %c0_i32 = arith.constant 0 : i32
    %c0_i32_0 = arith.constant 0 : i32
    %c0_i32_1 = arith.constant 0 : i32
    return %c0_i32, %c0_i32_0 : i32, i32
  }
  func.func @transform_3(%arg0: i32, %arg1: i32, %arg2: i32) -> (i32, i32) {
    %c0_i32 = arith.constant 0 : i32
    %c0_i32_0 = arith.constant 0 : i32
    %c0_i32_1 = arith.constant 0 : i32
    return %c0_i32, %c0_i32_0 : i32, i32
  }
  func.func @transform_4(%arg0: i32, %arg1: i32, %arg2: i32) -> (i32, i32) {
    %c0_i32 = arith.constant 0 : i32
    %c0_i32_0 = arith.constant 0 : i32
    %c0_i32_1 = arith.constant 0 : i32
    return %c0_i32, %c0_i32_0 : i32, i32
  }
  func.func @transform_5(%arg0: i32, %arg1: i32, %arg2: i32) -> (i32, i32) {
    %c0_i32 = arith.constant 0 : i32
    %c0_i32_0 = arith.constant 0 : i32
    %c0_i32_1 = arith.constant 0 : i32
    return %c0_i32, %c0_i32_0 : i32, i32
  }
  func.func @transform_6(%arg0: i32, %arg1: i32, %arg2: i32) -> (i32, i32) {
    %c0_i32 = arith.constant 0 : i32
    %c0_i32_0 = arith.constant 0 : i32
    %c0_i32_1 = arith.constant 0 : i32
    return %c0_i32, %c0_i32_0 : i32, i32
  }
  func.func @transform_7(%arg0: i32, %arg1: i32, %arg2: i32) -> (i32, i32) {
    %c1_i32 = arith.constant 1 : i32
    %0 = arith.muli %arg1, %c1_i32 : i32
    %1 = arith.addi %0, %arg2 : i32
    %c0_i32 = arith.constant 0 : i32
    %c0_i32_0 = arith.constant 0 : i32
    return %c0_i32, %1 : i32, i32
  }
  func.func @transform_8(%arg0: i32, %arg1: i32, %arg2: i32) -> (i32, i32) {
    %c1_i32 = arith.constant 1 : i32
    %0 = arith.muli %arg1, %c1_i32 : i32
    %1 = arith.addi %0, %arg2 : i32
    %c0_i32 = arith.constant 0 : i32
    %c0_i32_0 = arith.constant 0 : i32
    return %c0_i32, %1 : i32, i32
  }
  func.func @transform_9(%arg0: i32, %arg1: i32, %arg2: i32) -> (i32, i32) {
    %c1_i32 = arith.constant 1 : i32
    %0 = arith.muli %arg1, %c1_i32 : i32
    %1 = arith.addi %0, %arg2 : i32
    %c0_i32 = arith.constant 0 : i32
    return %arg0, %1 : i32, i32
  }
}

</mosaic_0001>

<bundles_post_ra>
// kernel: generator_forward.1
= control target key start
LH: loop header
LB: loop body
LE: loop exit
PB: predicated region body
PF: predicated region fallthrough
CT: control target
= control target key end

     0   :  { %14 = vsyncpa [#allocation4], 0  ;;  %s6122_s0 = inlined_call_operand.vmem [shape: bf16[16,32], index: 0, kind: input, shape index: {}]   ;;  %s6123_s1 = inlined_call_operand.vmem [shape: bf16[32,256], index: 1, kind: input, shape index: {}]   ;;  %s6124_s2 = inlined_call_operand.vmem [shape: f32[1,256], index: 2, kind: input, shape index: {}]   ;;  %s6125_s3 = inlined_call_operand.hbm [shape: bf16[256,512], index: 3, kind: input, shape index: {}]   ;;  %s6126_s4 = inlined_call_operand.vmem [shape: f32[1,512], index: 4, kind: input, shape index: {}]   ;;  %s6127_s5 = inlined_call_operand.hbm [shape: bf16[512,1024], index: 5, kind: input, shape index: {}]   ;;  %s6128_s6 = inlined_call_operand.vmem [shape: f32[1,1024], index: 6, kind: input, shape index: {}]   ;;  %s6129_s7 = inlined_call_operand.hbm [shape: bf16[1024,512], index: 7, kind: input, shape index: {}]   ;;  %s6130_s8 = inlined_call_operand.vmem [shape: f32[1,512], index: 8, kind: input, shape index: {}]   ;;  %s6131_s9 = inlined_call_operand.vmem [shape: f32[16,512], index: 9, kind: output, shape index: {}]  }
   0x1   :  { %15 = vsyncpa [#allocation6], 0  ;;  %s5903_s30 = smov [#allocation5]   ;;  %s5833_s13 = scalar_lea.hbm %s6127_s5, 32768 }
   0x2   :  { %s41_s10 = sshll.u32 %s5903_s30, 4  ;;  %p5834_p0 = scmp.ne.s32.totalorder %s6127_s5, %s5833_s13  ;;  %s42_s10 = int_to_ptr.vmem [resolvable:$true] %s41_s10 }
   0x3   :  { %p5837_p1 = scmp.lt.u32.totalorder %s5833_s13, %s6127_s5 }
   0x5   :  { %p5839_p2 = pnand %p5837_p1, %p5834_p0 }
   0x7   :  { %5842 = shalt.err (!%p5839_p2)
}
   0x8   :  { %s5843_s18 = scalar_lea.vmem %s42_s10, 32768  ;;  %p5848_p4 = scmp.lt.s32.totalorder %s42_s10, %s42_s10 }
   0x9   :  { %p5844_p3 = scmp.ne.s32.totalorder %s42_s10, %s5843_s18  ;;  %p5849_p5 = scmp.lt.s32.totalorder %s5843_s18, %s5843_s18 }
   0xb   :  { %p5850_p6 = por %p5849_p5, %p5848_p4 }
   0xd   :  { %p5851_p7 = pnand %p5850_p6, %p5844_p3 }
   0xf   :  { %5854 = shalt.err (!%p5851_p7)
}
  0x10   :  { %s5904_s19 = smov 512   ;;  %s5905_s20 = smov 32  }
  0x11   :  { %47 = dma.hbm_to_vmem [thread:$0]  %s6127_s5, 32768, %s42_s10, [#allocation6], %s5904_s19, %s5904_s19, %s5905_s20  }
  0x12   :  { %s5906_s23 = smov [#allocation3]   ;;  %s5855_s27 = scalar_lea.hbm %s6125_s3, 8192 }
  0x13   :  { %s27_s24 = sshll.u32 %s5906_s23, 4  ;;  %p5856_p8 = scmp.ne.s32.totalorder %s6125_s3, %s5855_s27  ;;  %s28_s24 = int_to_ptr.vmem [resolvable:$true] %s27_s24 }
  0x14   :  { %p5859_p9 = scmp.lt.u32.totalorder %s5855_s27, %s6125_s3 }
  0x16   :  { %p5861_p10 = pnand %p5859_p9, %p5856_p8 }
  0x18   :  { %5864 = shalt.err (!%p5861_p10)
}
  0x19   :  { %s5865_s12 = scalar_lea.vmem %s28_s24, 8192  ;;  %p5870_p12 = scmp.lt.s32.totalorder %s28_s24, %s28_s24 }
  0x1a   :  { %p5866_p11 = scmp.ne.s32.totalorder %s28_s24, %s5865_s12  ;;  %p5871_p13 = scmp.lt.s32.totalorder %s5865_s12, %s5865_s12 }
  0x1c   :  { %p5872_p0 = por %p5871_p13, %p5870_p12 }
  0x1e   :  { %p5873_p1 = pnand %p5872_p0, %p5866_p11 }
  0x20   :  { %5876 = shalt.err (!%p5873_p1)
}
  0x21   :  { %s5907_s5 = smov 256   ;;  %s5908_s10 = smov 16  }
  0x22   :  { %33 = dma.hbm_to_vmem [thread:$0]  %s6125_s3, 8192, %s28_s24, [#allocation4], %s5907_s5, %s5907_s5, %s5908_s10  }
  0x23   :  { %s5909_s15 = smov [#allocation7]   ;;  %s5877_s19 = scalar_lea.hbm %s6129_s7, 32768 }
  0x24   :  { %s59_s16 = sshll.u32 %s5909_s15, 4  ;;  %p5878_p2 = scmp.ne.s32.totalorder %s6129_s7, %s5877_s19  ;;  %s60_s16 = int_to_ptr.vmem [resolvable:$true] %s59_s16 }
  0x25   :  { %p5881_p3 = scmp.lt.u32.totalorder %s5877_s19, %s6129_s7 }
  0x27   :  { %p5883_p4 = pnand %p5881_p3, %p5878_p2 }
  0x29   :  { %5886 = shalt.err (!%p5883_p4)
}
  0x2a   :  { %s5887_s25 = scalar_lea.vmem %s60_s16, 32768  ;;  %p5892_p6 = scmp.lt.s32.totalorder %s60_s16, %s60_s16 }
  0x2b   :  { %p5888_p5 = scmp.ne.s32.totalorder %s60_s16, %s5887_s25  ;;  %p5893_p7 = scmp.lt.s32.totalorder %s5887_s25, %s5887_s25 }
  0x2d   :  { %p5894_p8 = por %p5893_p7, %p5892_p6 }
  0x2f   :  { %p5895_p9 = pnand %p5894_p8, %p5888_p5 }
  0x31   :  { %5898 = shalt.err (!%p5895_p9)
}
  0x32   :  { %65 = dma.hbm_to_vmem [thread:$0]  %s6129_s7, 32768, %s60_s16, [#allocation6], %s5907_s5, %s5907_s5, %s5908_s10  }
  0x33   :  { %5899 = dma.done.wait [#allocation4], 8192  }
  0x34   :  { %5900 = vsyncadd [#allocation4], 4294959104 }
  0x35   :  { %5901 = dma.done.wait [#allocation6], 65536  }
  0x36   :  { %5902 = vsyncadd [#allocation6], 4294901760  ;;  %v5910_v0 = vmov 0   ;;  %v5314_v1 = vld [vmem:[%s6123_s1 + $0x4] ss:$8 sps:$4 sm:$0xff]   ;;  %vm160_vm0 = vcmask 261120  }
  0x37   :  { %196 = vmatprep.mubr.bf16.mxu0 %v5910_v0  ;;  %v5316_v2 = vld [vmem:[%s6123_s1] ss:$8 sps:$4 sm:$0xff]   ;;  %164 = vmatprep.subr.bf16.mxu0 %v5314_v1  ;;  %v5317_v3 = vld [vmem:[%s6123_s1 + $0x14] ss:$8 sps:$4 sm:$0xff]   ;;  %v5319_v4 = vld [vmem:[%s6123_s1 + $0x10] ss:$8 sps:$4 sm:$0xff]  }
  0x38   :  { %165 = vmatpush1.bf16.msra.mxu0 %v5316_v2  ;;  %v5320_v5 = vld [vmem:[%s6122_s0] sm:$0xff]   ;;  %v5323_v7 = vld [vmem:[#allocation3 + $0x8] ss:$16 sps:$4 sm:$0xff]   ;;  %v5325_v8 = vld [vmem:[#allocation3 + $0xc] ss:$16 sps:$4 sm:$0xff]  }
  0x39   :  { %166 = vmatprep.subr.bf16.mxu0 %v5317_v3  ;;  %v5321_v6 = vld [vmem:[#allocation3 + $0x4] ss:$16 sps:$4 sm:$0xff]   ;;  %v5326_v9 = vld [vmem:[#allocation3] ss:$16 sps:$4 sm:$0xff]   ;;  %v5331_v11 = vld [vmem:[#allocation3 + $0x2c] ss:$16 sps:$4 sm:$0xff]  }
  0x3a   :  { %619 = vmatprep.subr.bf16.mxu1 %v5321_v6  ;;  %v5327_v10 = vld [vmem:[#allocation3 + $0x24] ss:$16 sps:$4 sm:$0xff]   ;;  %v5332_v12 = vld [vmem:[#allocation3 + $0x20] ss:$16 sps:$4 sm:$0xff]   ;;  %v5329_v14 = vld [vmem:[#allocation3 + $0x28] ss:$16 sps:$4 sm:$0xff]  }
  0x3b   :  { %620 = vmatpush1.bf16.msra.mxu1 %v5326_v9  ;;  %v5333_v13 = vld [vmem:[#allocation3 + $0x44] ss:$16 sps:$4 sm:$0xff]   ;;  %v5337_v15 = vld [vmem:[#allocation3 + $0x4c] ss:$16 sps:$4 sm:$0xff]   ;;  %v5338_v16 = vld [vmem:[#allocation3 + $0x40] ss:$16 sps:$4 sm:$0xff]  }
  0x3c   :  { %167 = vmatpush1.bf16.msra.mxu0 %v5319_v4  ;;  %621 = vmatprep.subr.bf16.mxu1 %v5327_v10  ;;  %v5339_v17 = vld [vmem:[#allocation3 + $0x64] ss:$16 sps:$4 sm:$0xff]   ;;  %v5335_v18 = vld [vmem:[#allocation3 + $0x48] ss:$16 sps:$4 sm:$0xff]   ;;  %v5343_v19 = vld [vmem:[#allocation3 + $0x6c] ss:$16 sps:$4 sm:$0xff]  }
  0x3d   :  { %662 = vmatprep.subr.bf16.mxu0 %v5325_v8  ;;  %v5344_v20 = vld [vmem:[#allocation3 + $0x60] ss:$16 sps:$4 sm:$0xff]   ;;  %v5345_v21 = vld [vmem:[#allocation3 + $0x84] ss:$16 sps:$4 sm:$0xff]   ;;  %v5341_v22 = vld [vmem:[#allocation3 + $0x68] ss:$16 sps:$4 sm:$0xff]  }
  0x3e   :  { %v5349_v23 = vld [vmem:[#allocation3 + $0x8c] ss:$16 sps:$4 sm:$0xff]   ;;  %v5350_v24 = vld [vmem:[#allocation3 + $0x80] ss:$16 sps:$4 sm:$0xff]   ;;  %v5351_v25 = vld [vmem:[#allocation3 + $0xa4] ss:$16 sps:$4 sm:$0xff]  }
  0x3f   :  { %4665 = vmatmul.mubr.msk.bf16.vlgmr.msra.gmra.mrb[0].mxu0 %vm160_vm0, %v5320_v5  ;;  %622 = vmatpush1.bf16.msra.mxu1 %v5332_v12  ;;  %v5347_v26 = vld [vmem:[#allocation3 + $0x88] ss:$16 sps:$4 sm:$0xff]   ;;  %v5355_v27 = vld [vmem:[#allocation3 + $0xac] ss:$16 sps:$4 sm:$0xff]   ;;  %v5356_v28 = vld [vmem:[#allocation3 + $0xa0] ss:$16 sps:$4 sm:$0xff]  }
  0x40   :  { %663 = vmatpush1.bf16.msra.mxu0 %v5323_v7  ;;  %623 = vmatprep.subr.bf16.mxu1 %v5333_v13  ;;  %v5357_v29 = vld [vmem:[#allocation3 + $0xc4] ss:$16 sps:$4 sm:$0xff]   ;;  %v5353_v30 = vld [vmem:[#allocation3 + $0xa8] ss:$16 sps:$4 sm:$0xff]   ;;  %v5361_v31 = vld [vmem:[#allocation3 + $0xcc] ss:$16 sps:$4 sm:$0xff]  }
  0x41   :  { %664 = vmatprep.subr.bf16.mxu0 %v5331_v11  ;;  %v5362_v32 = vld [vmem:[#allocation3 + $0xc0] ss:$16 sps:$4 sm:$0xff]   ;;  %v5363_v33 = vld [vmem:[#allocation3 + $0xe4] ss:$16 sps:$4 sm:$0xff]   ;;  %v5359_v34 = vld [vmem:[#allocation3 + $0xc8] ss:$16 sps:$4 sm:$0xff]  }
  0x42   :  { %v5367_v35 = vld [vmem:[#allocation3 + $0xec] ss:$16 sps:$4 sm:$0xff]   ;;  %v5368_v36 = vld [vmem:[#allocation3 + $0xe0] ss:$16 sps:$4 sm:$0xff]   ;;  %v5369_v37 = vld [vmem:[#allocation3 + $0x104] ss:$16 sps:$4 sm:$0xff]  }
  0x43   :  { %624 = vmatpush1.bf16.msra.mxu1 %v5338_v16  ;;  %v5365_v38 = vld [vmem:[#allocation3 + $0xe8] ss:$16 sps:$4 sm:$0xff]   ;;  %v5373_v39 = vld [vmem:[#allocation3 + $0x10c] ss:$16 sps:$4 sm:$0xff]   ;;  %v5374_v40 = vld [vmem:[#allocation3 + $0x100] ss:$16 sps:$4 sm:$0xff]  }
  0x44   :  { %665 = vmatpush1.bf16.msra.mxu0 %v5329_v14  ;;  %625 = vmatprep.subr.bf16.mxu1 %v5339_v17  ;;  %v5375_v41 = vld [vmem:[#allocation3 + $0x124] ss:$16 sps:$4 sm:$0xff]   ;;  %v5371_v42 = vld [vmem:[#allocation3 + $0x108] ss:$16 sps:$4 sm:$0xff]   ;;  %v5379_v43 = vld [vmem:[#allocation3 + $0x12c] ss:$16 sps:$4 sm:$0xff]   ;;  %v125_v14 = vlaneseq }
  0x45   :  { %666 = vmatprep.subr.bf16.mxu0 %v5337_v15  ;;  %v5380_v44 = vld [vmem:[#allocation3 + $0x120] ss:$16 sps:$4 sm:$0xff]   ;;  %v5381_v45 = vld [vmem:[#allocation3 + $0x144] ss:$16 sps:$4 sm:$0xff]   ;;  %v5377_v46 = vld [vmem:[#allocation3 + $0x128] ss:$16 sps:$4 sm:$0xff]  }
  0x46   :  { %v5385_v47 = vld [vmem:[#allocation3 + $0x14c] ss:$16 sps:$4 sm:$0xff]   ;;  %v5386_v48 = vld [vmem:[#allocation3 + $0x140] ss:$16 sps:$4 sm:$0xff]   ;;  %v5387_v49 = vld [vmem:[#allocation3 + $0x164] ss:$16 sps:$4 sm:$0xff]  }
  0x47   :  { %626 = vmatpush1.bf16.msra.mxu1 %v5344_v20  ;;  %v5383_v50 = vld [vmem:[#allocation3 + $0x148] ss:$16 sps:$4 sm:$0xff]   ;;  %v5391_v51 = vld [vmem:[#allocation3 + $0x16c] ss:$16 sps:$4 sm:$0xff]   ;;  %v5392_v52 = vld [vmem:[#allocation3 + $0x160] ss:$16 sps:$4 sm:$0xff]  }
  0x48   :  { %667 = vmatpush1.bf16.msra.mxu0 %v5335_v18  ;;  %627 = vmatprep.subr.bf16.mxu1 %v5345_v21  ;;  %v5393_v53 = vld [vmem:[#allocation3 + $0x184] ss:$16 sps:$4 sm:$0xff]   ;;  %v5389_v54 = vld [vmem:[#allocation3 + $0x168] ss:$16 sps:$4 sm:$0xff]   ;;  %v5397_v55 = vld [vmem:[#allocation3 + $0x18c] ss:$16 sps:$4 sm:$0xff]  }
  0x49   :  { %668 = vmatprep.subr.bf16.mxu0 %v5343_v19  ;;  %v5398_v56 = vld [vmem:[#allocation3 + $0x180] ss:$16 sps:$4 sm:$0xff]   ;;  %v5399_v57 = vld [vmem:[#allocation3 + $0x1a4] ss:$16 sps:$4 sm:$0xff]   ;;  %v5395_v58 = vld [vmem:[#allocation3 + $0x188] ss:$16 sps:$4 sm:$0xff]  }
  0x4a   :  { %v5403_v59 = vld [vmem:[#allocation3 + $0x1ac] ss:$16 sps:$4 sm:$0xff]   ;;  %v5401_v60 = vld [vmem:[#allocation3 + $0x1a8] ss:$16 sps:$4 sm:$0xff]   ;;  %v5404_v61 = vld [vmem:[#allocation3 + $0x1a0] ss:$16 sps:$4 sm:$0xff]  }
  0x4b   :  { %628 = vmatpush1.bf16.msra.mxu1 %v5350_v24  ;;  %v5405_v62 = vld [vmem:[#allocation3 + $0x1c4] ss:$16 sps:$4 sm:$0xff]   ;;  %v5409_v63 = vld [vmem:[#allocation3 + $0x1cc] ss:$16 sps:$4 sm:$0xff]   ;;  %v5407_v0 = vld [vmem:[#allocation3 + $0x1c8] ss:$16 sps:$4 sm:$0xff]  }
  0x4c   :  { %669 = vmatpush1.bf16.msra.mxu0 %v5341_v22  ;;  %629 = vmatprep.subr.bf16.mxu1 %v5351_v25  ;;  %v5410_v1 = vld [vmem:[#allocation3 + $0x1c0] ss:$16 sps:$4 sm:$0xff]   ;;  %v5411_v2 = vld [vmem:[#allocation3 + $0x1e4] ss:$16 sps:$4 sm:$0xff]   ;;  %v5415_v3 = vld [vmem:[#allocation3 + $0x1ec] ss:$16 sps:$4 sm:$0xff]  }
  0x4d   :  { %670 = vmatprep.subr.bf16.mxu0 %v5349_v23  ;;  %v5413_v4 = vld [vmem:[#allocation3 + $0x1e8] ss:$16 sps:$4 sm:$0xff]   ;;  %v5416_v5 = vld [vmem:[#allocation3 + $0x1e0] ss:$16 sps:$4 sm:$0xff]   ;;  %v6012_v15 = vshrl.u32 %v125_v14, 7 }
  0x4e   :  { %v717_v6 = vld [vmem:[#allocation5] sm:$0xff]  ;;  %v718_v8 = vld [vmem:[#allocation5 + $0x8] sm:$0xff] }
  0x4f   :  { %630 = vmatpush1.bf16.msra.mxu1 %v5356_v28  ;;  %v721_v7 = vld [vmem:[#allocation5 + $0x20] sm:$0xff]  ;;  %v722_v11 = vld [vmem:[#allocation5 + $0x28] sm:$0xff]  ;;  %v6015_v16 = vsub.s32 0, %v6012_v15  ;;  %v6021_v18 = vsub.s32 1, %v6012_v15 }
  0x50   :  { %671 = vmatpush1.bf16.msra.mxu0 %v5347_v26  ;;  %631 = vmatprep.subr.bf16.mxu1 %v5357_v29  ;;  %v4730_v9 = vcombine.low %v717_v6, %v721_v7  ;;  %v4731_v10 = vcombine.high %v717_v6, %v721_v7  ;;  %v4732_v12 = vcombine.low %v718_v8, %v722_v11  ;;  %v123_v17 = vld [vmem:[%s6124_s2] sm:$0x3] }
  0x51   :  { %672 = vmatprep.subr.bf16.mxu0 %v5355_v27  ;;  %v4733_v13 = vcombine.high %v718_v8, %v722_v11  ;;  %v128_v19 = vrot.slane %v123_v17, %v6015_v16  ;;  %v132_v20 = vrot.slane %v123_v17, %v6021_v18  ;;  %v766_v11 = vld [vmem:[#allocation5 + $0x188] sm:$0xff] }
  0x53   :  { %632 = vmatpush1.bf16.msra.mxu1 %v5362_v32 }
  0x54   :  { %673 = vmatpush1.bf16.msra.mxu0 %v5353_v30  ;;  %633 = vmatprep.subr.bf16.mxu1 %v5363_v33 }
  0x55   :  { %674 = vmatprep.subr.bf16.mxu0 %v5361_v31  ;;  %v725_v31 = vld [vmem:[#allocation5 + $0x40] sm:$0xff] }
  0x57   :  { %634 = vmatpush1.bf16.msra.mxu1 %v5368_v36  ;;  %v730_v36 = vld [vmem:[#allocation5 + $0x68] sm:$0xff] }
  0x58   :  { %675 = vmatpush1.bf16.msra.mxu0 %v5359_v34  ;;  %635 = vmatprep.subr.bf16.mxu1 %v5369_v37  ;;  %v729_v34 = vld [vmem:[#allocation5 + $0x60] sm:$0xff] }
  0x59   :  { %676 = vmatprep.subr.bf16.mxu0 %v5367_v35  ;;  %v726_v35 = vld [vmem:[#allocation5 + $0x48] sm:$0xff] }
  0x5b   :  { %636 = vmatpush1.bf16.msra.mxu1 %v5374_v40  ;;  %v4741_v40 = vcombine.high %v726_v35, %v730_v36 }
  0x5c   :  { %677 = vmatpush1.bf16.msra.mxu0 %v5365_v38  ;;  %637 = vmatprep.subr.bf16.mxu1 %v5375_v41  ;;  %v733_v41 = vld [vmem:[#allocation5 + $0x80] sm:$0xff] }
  0x5d   :  { %678 = vmatprep.subr.bf16.mxu0 %v5373_v39  ;;  %v4739_v39 = vcombine.high %v725_v31, %v729_v34 }
  0x5f   :  { %638 = vmatpush1.bf16.msra.mxu1 %v5380_v44  ;;  %v738_v44 = vld [vmem:[#allocation5 + $0xa8] sm:$0xff] }
  0x60   :  { %679 = vmatpush1.bf16.msra.mxu0 %v5371_v42  ;;  %639 = vmatprep.subr.bf16.mxu1 %v5381_v45  ;;  %v737_v42 = vld [vmem:[#allocation5 + $0xa0] sm:$0xff]  ;;  %v4738_v45 = vcombine.low %v725_v31, %v729_v34  ;;  %v786_v31 = vld [vmem:[#allocation5 + $0x228] sm:$0xff] }
  0x61   :  { %680 = vmatprep.subr.bf16.mxu0 %v5379_v43  ;;  %v734_v43 = vld [vmem:[#allocation5 + $0x88] sm:$0xff] }
  0x63   :  { %640 = vmatpush1.bf16.msra.mxu1 %v5386_v48  ;;  %v4749_v48 = vcombine.high %v734_v43, %v738_v44 }
  0x64   :  { %681 = vmatpush1.bf16.msra.mxu0 %v5377_v46  ;;  %641 = vmatprep.subr.bf16.mxu1 %v5387_v49  ;;  %v4740_v46 = vcombine.low %v726_v35, %v730_v36  ;;  %v741_v49 = vld [vmem:[#allocation5 + $0xc0] sm:$0xff] }
  0x65   :  { %682 = vmatprep.subr.bf16.mxu0 %v5385_v47  ;;  %v4747_v47 = vcombine.high %v733_v41, %v737_v42  ;;  %v789_v36 = vld [vmem:[#allocation5 + $0x240] sm:$0xff] }
  0x67   :  { %642 = vmatpush1.bf16.msra.mxu1 %v5392_v52  ;;  %v746_v52 = vld [vmem:[#allocation5 + $0xe8] sm:$0xff] }
  0x68   :  { %683 = vmatpush1.bf16.msra.mxu0 %v5383_v50  ;;  %643 = vmatprep.subr.bf16.mxu1 %v5393_v53  ;;  %v745_v50 = vld [vmem:[#allocation5 + $0xe0] sm:$0xff]  ;;  %v4746_v53 = vcombine.low %v733_v41, %v737_v42 }
  0x69   :  { %684 = vmatprep.subr.bf16.mxu0 %v5391_v51  ;;  %v742_v51 = vld [vmem:[#allocation5 + $0xc8] sm:$0xff] }
  0x6b   :  { %644 = vmatpush1.bf16.msra.mxu1 %v5398_v56  ;;  %v4757_v56 = vcombine.high %v742_v51, %v746_v52 }
  0x6c   :  { %685 = vmatpush1.bf16.msra.mxu0 %v5389_v54  ;;  %645 = vmatprep.subr.bf16.mxu1 %v5399_v57  ;;  %v4748_v54 = vcombine.low %v734_v43, %v738_v44  ;;  %v749_v57 = vld [vmem:[#allocation5 + $0x100] sm:$0xff] }
  0x6d   :  { %686 = vmatprep.subr.bf16.mxu0 %v5397_v55  ;;  %v4755_v55 = vcombine.high %v741_v49, %v745_v50  ;;  %v797_v44 = vld [vmem:[#allocation5 + $0x280] sm:$0xff] }
  0x6f   :  { %646 = vmatpush1.bf16.msra.mxu1 %v5404_v61  ;;  %v4754_v61 = vcombine.low %v741_v49, %v745_v50 }
  0x70   :  { %687 = vmatpush1.bf16.msra.mxu0 %v5395_v58  ;;  %647 = vmatprep.subr.bf16.mxu1 %v5405_v62  ;;  %v753_v58 = vld [vmem:[#allocation5 + $0x120] sm:$0xff]  ;;  %v4756_v62 = vcombine.low %v742_v51, %v746_v52 }
  0x71   :  { %688 = vmatprep.subr.bf16.mxu0 %v5403_v59  ;;  %v750_v59 = vld [vmem:[#allocation5 + $0x108] sm:$0xff]  ;;  %v805_v52 = vld [vmem:[#allocation5 + $0x2c0] sm:$0xff] }
  0x73   :  { %648 = vmatpush1.bf16.msra.mxu1 %v5410_v1  ;;  %v757_v1 = vld [vmem:[#allocation5 + $0x140] sm:$0xff] }
  0x74   :  { %689 = vmatpush1.bf16.msra.mxu0 %v5401_v60  ;;  %649 = vmatprep.subr.bf16.mxu1 %v5411_v2  ;;  %v754_v60 = vld [vmem:[#allocation5 + $0x128] sm:$0xff]  ;;  %v761_v2 = vld [vmem:[#allocation5 + $0x160] sm:$0xff] }
  0x75   :  { %690 = vmatprep.subr.bf16.mxu0 %v5409_v63  ;;  %v4763_v63 = vcombine.high %v749_v57, %v753_v58  ;;  %v4764_v6 = vcombine.low %v750_v59, %v754_v60  ;;  %v4771_v7 = vcombine.high %v757_v1, %v761_v2 }
  0x77   :  { %650 = vmatpush1.bf16.msra.mxu1 %v5416_v5  ;;  %v4762_v5 = vcombine.low %v749_v57, %v753_v58 }
  0x78   :  { %691 = vmatpush1.bf16.msra.mxu0 %v5407_v0  ;;  %2295 = vmatprep.subr.bf16.mxu1 %v4731_v10  ;;  %v4765_v0 = vcombine.high %v750_v59, %v754_v60  ;;  %v769_v10 = vld [vmem:[#allocation5 + $0x1a0] sm:$0xff] }
  0x79   :  { %692 = vmatprep.subr.bf16.mxu0 %v5415_v3  ;;  %v758_v3 = vld [vmem:[#allocation5 + $0x148] sm:$0xff]  ;;  %v813_v60 = vld [vmem:[#allocation5 + $0x300] sm:$0xff] }
  0x7c   :  { %693 = vmatpush1.bf16.msra.mxu0 %v5413_v4  ;;  %v762_v4 = vld [vmem:[#allocation5 + $0x168] sm:$0xff] }
  0x7d   :  { %2381 = vmatprep.subr.bf16.mxu0 %v4733_v13  ;;  %v4773_v8 = vcombine.high %v758_v3, %v762_v4  ;;  %v4770_v13 = vcombine.low %v757_v1, %v761_v2  ;;  %v4772_v14 = vcombine.low %v758_v3, %v762_v4  ;;  %v821_v4 = vld [vmem:[#allocation5 + $0x340] sm:$0xff] }
 0x112   :  { %v198_v21 = vpop.f32.mrb[0].mxu0 }
 0x113   :  { %v199_v22 = vadd.f32 %v198_v21, %v128_v19  ;;  %v200_v23 = vpop.f32.mrb[1].mxu0  ;;  %v777_v21 = vld [vmem:[#allocation5 + $0x1e0] sm:$0xff] }
 0x114   :  { %v201_v24 = vadd.f32 %v200_v23, %v132_v20  ;;  %v202_v25 = vpop.f32.mrb[2].mxu0  ;;  %v778_v23 = vld [vmem:[#allocation5 + $0x1e8] sm:$0xff] }
 0x115   :  { %v203_v26 = vadd.f32 %v202_v25, %v128_v19  ;;  %v204_v27 = vpop.f32.mrb[3].mxu0  ;;  %v207_v29 = vmax.f32 %v199_v22, 0.0  ;;  %v774_v22 = vld [vmem:[#allocation5 + $0x1c8] sm:$0xff] }
 0x116   :  { %v205_v28 = vadd.f32 %v204_v27, %v132_v20  ;;  %v208_v32 = vmax.f32 %v201_v24, 0.0  ;;  %v773_v20 = vld [vmem:[#allocation5 + $0x1c0] sm:$0xff]  ;;  %v4789_v27 = vcombine.high %v774_v22, %v778_v23 }
 0x117   :  { %v209_v30 = vmax.f32 %v203_v26, 0.0  ;;  %v4787_v26 = vcombine.high %v773_v20, %v777_v21 }
 0x118   :  { %v210_v33 = vmax.f32 %v205_v28, 0.0  ;;  %v781_v28 = vld [vmem:[#allocation5 + $0x200] sm:$0xff] }
 0x119   :  { %v211_v37 = vpack.c.bf16 %v209_v30, %v207_v29  ;;  %v785_v29 = vld [vmem:[#allocation5 + $0x220] sm:$0xff]  ;;  %v782_v30 = vld [vmem:[#allocation5 + $0x208] sm:$0xff] }
 0x11a   :  { %v212_v38 = vpack.c.bf16 %v210_v33, %v208_v32  ;;  %v4786_v32 = vcombine.low %v773_v20, %v777_v21  ;;  %v4788_v33 = vcombine.low %v774_v22, %v778_v23  ;;  %v4795_v34 = vcombine.high %v781_v28, %v785_v29  ;;  %v834_v21 = vld [vmem:[#allocation5 + $0x3a8] sm:$0xff] }
 0x11b   :  { %v4797_v35 = vcombine.high %v782_v30, %v786_v31  ;;  %v4796_v41 = vcombine.low %v782_v30, %v786_v31 }
 0x11c   :  { %651 = vmatprep.mubr.bf16.mxu1 %v212_v38  ;;  %694 = vmatprep.mubr.bf16.mxu0 %v212_v38  ;;  %v790_v38 = vld [vmem:[#allocation5 + $0x248] sm:$0xff] }
 0x11d   :  { %652 = vmatmul.mubr.bf16.vlgmr.msra.gmra.mrb[0].mxu1 %v211_v37  ;;  %695 = vmatmul.mubr.bf16.vlgmr.msra.gmra.mrb[4].mxu0 %v211_v37  ;;  %v793_v37 = vld [vmem:[#allocation5 + $0x260] sm:$0xff] }
 0x11e   :  { %2296 = vmatpush1.bf16.msra.mxu1 %v4730_v9  ;;  %2382 = vmatpush1.bf16.msra.mxu0 %v4732_v12  ;;  %v765_v9 = vld [vmem:[#allocation5 + $0x180] sm:$0xff]  ;;  %v770_v12 = vld [vmem:[#allocation5 + $0x1a8] sm:$0xff]  ;;  %v4803_v42 = vcombine.high %v789_v36, %v793_v37 }
 0x11f   :  { %2297 = vmatprep.subr.bf16.mxu1 %v4739_v39  ;;  %2383 = vmatprep.subr.bf16.mxu0 %v4741_v40  ;;  %v4779_v17 = vcombine.high %v765_v9, %v769_v10  ;;  %v4781_v19 = vcombine.high %v766_v11, %v770_v12  ;;  %v4778_v24 = vcombine.low %v765_v9, %v769_v10  ;;  %v794_v39 = vld [vmem:[#allocation5 + $0x268] sm:$0xff] }
 0x120   :  { %v4780_v25 = vcombine.low %v766_v11, %v770_v12  ;;  %v4794_v40 = vcombine.low %v781_v28, %v785_v29  ;;  %v4805_v43 = vcombine.high %v790_v38, %v794_v39  ;;  %v4804_v49 = vcombine.low %v790_v38, %v794_v39  ;;  %v842_v29 = vld [vmem:[#allocation5 + $0x3e8] sm:$0xff] }
 0x122   :  { %2298 = vmatpush1.bf16.msra.mxu1 %v4738_v45  ;;  %2384 = vmatpush1.bf16.msra.mxu0 %v4740_v46  ;;  %v801_v45 = vld [vmem:[#allocation5 + $0x2a0] sm:$0xff]  ;;  %v798_v46 = vld [vmem:[#allocation5 + $0x288] sm:$0xff] }
 0x123   :  { %2299 = vmatprep.subr.bf16.mxu1 %v4747_v47  ;;  %2385 = vmatprep.subr.bf16.mxu0 %v4749_v48  ;;  %v802_v47 = vld [vmem:[#allocation5 + $0x2a8] sm:$0xff]  ;;  %v4802_v48 = vcombine.low %v789_v36, %v793_v37  ;;  %v4811_v50 = vcombine.high %v797_v44, %v801_v45 }
 0x124   :  { %v4813_v51 = vcombine.high %v798_v46, %v802_v47  ;;  %v4812_v57 = vcombine.low %v798_v46, %v802_v47  ;;  %v850_v37 = vld [vmem:[#allocation5 + $0x428] sm:$0xff] }
 0x126   :  { %2300 = vmatpush1.bf16.msra.mxu1 %v4746_v53  ;;  %2386 = vmatpush1.bf16.msra.mxu0 %v4748_v54  ;;  %v809_v53 = vld [vmem:[#allocation5 + $0x2e0] sm:$0xff]  ;;  %v806_v54 = vld [vmem:[#allocation5 + $0x2c8] sm:$0xff] }
 0x127   :  { %2301 = vmatprep.subr.bf16.mxu1 %v4755_v55  ;;  %2387 = vmatprep.subr.bf16.mxu0 %v4757_v56  ;;  %v810_v55 = vld [vmem:[#allocation5 + $0x2e8] sm:$0xff]  ;;  %v4810_v56 = vcombine.low %v797_v44, %v801_v45  ;;  %v4819_v58 = vcombine.high %v805_v52, %v809_v53 }
 0x128   :  { %v4821_v59 = vcombine.high %v806_v54, %v810_v55  ;;  %v4820_v1 = vcombine.low %v806_v54, %v810_v55 }
 0x12a   :  { %2302 = vmatpush1.bf16.msra.mxu1 %v4754_v61  ;;  %2388 = vmatpush1.bf16.msra.mxu0 %v4756_v62  ;;  %v817_v61 = vld [vmem:[#allocation5 + $0x320] sm:$0xff]  ;;  %v814_v62 = vld [vmem:[#allocation5 + $0x308] sm:$0xff] }
 0x12b   :  { %2303 = vmatprep.subr.bf16.mxu1 %v4763_v63  ;;  %2389 = vmatprep.subr.bf16.mxu0 %v4765_v0  ;;  %v818_v63 = vld [vmem:[#allocation5 + $0x328] sm:$0xff]  ;;  %v4818_v0 = vcombine.low %v805_v52, %v809_v53  ;;  %v4827_v2 = vcombine.high %v813_v60, %v817_v61 }
 0x12c   :  { %v4829_v3 = vcombine.high %v814_v62, %v818_v63  ;;  %v4828_v9 = vcombine.low %v814_v62, %v818_v63 }
 0x12e   :  { %2304 = vmatpush1.bf16.msra.mxu1 %v4762_v5  ;;  %2390 = vmatpush1.bf16.msra.mxu0 %v4764_v6  ;;  %v825_v5 = vld [vmem:[#allocation5 + $0x360] sm:$0xff]  ;;  %v822_v6 = vld [vmem:[#allocation5 + $0x348] sm:$0xff] }
 0x12f   :  { %2305 = vmatprep.subr.bf16.mxu1 %v4771_v7  ;;  %2391 = vmatprep.subr.bf16.mxu0 %v4773_v8  ;;  %v826_v7 = vld [vmem:[#allocation5 + $0x368] sm:$0xff]  ;;  %v4826_v8 = vcombine.low %v813_v60, %v817_v61  ;;  %v4835_v10 = vcombine.high %v821_v4, %v825_v5  ;;  %v4834_v12 = vcombine.low %v821_v4, %v825_v5 }
 0x130   :  { %v4837_v11 = vcombine.high %v822_v6, %v826_v7 }
 0x132   :  { %2306 = vmatpush1.bf16.msra.mxu1 %v4770_v13  ;;  %2392 = vmatpush1.bf16.msra.mxu0 %v4772_v14  ;;  %v4836_v13 = vcombine.low %v822_v6, %v826_v7  ;;  %v829_v14 = vld [vmem:[#allocation5 + $0x380] sm:$0xff] }
 0x133   :  { %2307 = vmatprep.subr.bf16.mxu1 %v4779_v17  ;;  %2393 = vmatprep.subr.bf16.mxu0 %v4781_v19  ;;  %v833_v17 = vld [vmem:[#allocation5 + $0x3a0] sm:$0xff]  ;;  %v830_v19 = vld [vmem:[#allocation5 + $0x388] sm:$0xff] }
 0x134   :  { %v4843_v20 = vcombine.high %v829_v14, %v833_v17  ;;  %v4842_v22 = vcombine.low %v829_v14, %v833_v17  ;;  %v4844_v23 = vcombine.low %v830_v19, %v834_v21 }
 0x136   :  { %2308 = vmatpush1.bf16.msra.mxu1 %v4778_v24  ;;  %2394 = vmatpush1.bf16.msra.mxu0 %v4780_v25  ;;  %v4845_v24 = vcombine.high %v830_v19, %v834_v21  ;;  %v837_v25 = vld [vmem:[#allocation5 + $0x3c0] sm:$0xff] }
 0x137   :  { %2309 = vmatprep.subr.bf16.mxu1 %v4787_v26  ;;  %2395 = vmatprep.subr.bf16.mxu0 %v4789_v27  ;;  %v841_v26 = vld [vmem:[#allocation5 + $0x3e0] sm:$0xff]  ;;  %v838_v27 = vld [vmem:[#allocation5 + $0x3c8] sm:$0xff] }
 0x138   :  { %v4851_v28 = vcombine.high %v837_v25, %v841_v26  ;;  %v4850_v30 = vcombine.low %v837_v25, %v841_v26  ;;  %v4852_v31 = vcombine.low %v838_v27, %v842_v29  ;;  %v861_v19 = vld [vmem:[#allocation5 + $0x480] sm:$0xff] }
 0x13a   :  { %2310 = vmatpush1.bf16.msra.mxu1 %v4786_v32  ;;  %2396 = vmatpush1.bf16.msra.mxu0 %v4788_v33  ;;  %v4853_v32 = vcombine.high %v838_v27, %v842_v29  ;;  %v845_v33 = vld [vmem:[#allocation5 + $0x400] sm:$0xff] }
 0x13b   :  { %2311 = vmatprep.subr.bf16.mxu1 %v4795_v34  ;;  %2397 = vmatprep.subr.bf16.mxu0 %v4797_v35  ;;  %v849_v34 = vld [vmem:[#allocation5 + $0x420] sm:$0xff]  ;;  %v846_v35 = vld [vmem:[#allocation5 + $0x408] sm:$0xff] }
 0x13c   :  { %v4859_v36 = vcombine.high %v845_v33, %v849_v34  ;;  %v4858_v38 = vcombine.low %v845_v33, %v849_v34  ;;  %v4860_v39 = vcombine.low %v846_v35, %v850_v37  ;;  %v869_v29 = vld [vmem:[#allocation5 + $0x4c0] sm:$0xff] }
 0x13e   :  { %2312 = vmatpush1.bf16.msra.mxu1 %v4794_v40  ;;  %2398 = vmatpush1.bf16.msra.mxu0 %v4796_v41  ;;  %v4861_v40 = vcombine.high %v846_v35, %v850_v37  ;;  %v6026_v41 = vsub.s32 2, %v6012_v15  ;;  %v877_v37 = vld [vmem:[#allocation5 + $0x500] sm:$0xff] }
 0x13f   :  { %2313 = vmatprep.subr.bf16.mxu1 %v4803_v42  ;;  %2399 = vmatprep.subr.bf16.mxu0 %v4805_v43  ;;  %v277_v42 = vld [vmem:[%s6126_s4] sm:$0xf]  ;;  %v6032_v43 = vsub.s32 3, %v6012_v15 }
 0x140   :  { %v282_v44 = vrot.slane %v277_v42, %v6015_v16  ;;  %v290_v45 = vrot.slane %v277_v42, %v6026_v41  ;;  %v286_v46 = vrot.slane %v277_v42, %v6021_v18 }
 0x141   :  { %v294_v47 = vrot.slane %v277_v42, %v6032_v43 }
 0x142   :  { %2314 = vmatpush1.bf16.msra.mxu1 %v4802_v48  ;;  %2400 = vmatpush1.bf16.msra.mxu0 %v4804_v49 }
 0x143   :  { %2315 = vmatprep.subr.bf16.mxu1 %v4811_v50  ;;  %2401 = vmatprep.subr.bf16.mxu0 %v4813_v51 }
 0x146   :  { %2316 = vmatpush1.bf16.msra.mxu1 %v4810_v56  ;;  %2402 = vmatpush1.bf16.msra.mxu0 %v4812_v57 }
 0x147   :  { %2317 = vmatprep.subr.bf16.mxu1 %v4819_v58  ;;  %2403 = vmatprep.subr.bf16.mxu0 %v4821_v59 }
 0x14a   :  { %2318 = vmatpush1.bf16.msra.mxu1 %v4818_v0  ;;  %2404 = vmatpush1.bf16.msra.mxu0 %v4820_v1 }
 0x14b   :  { %2319 = vmatprep.subr.bf16.mxu1 %v4827_v2  ;;  %2405 = vmatprep.subr.bf16.mxu0 %v4829_v3 }
 0x14e   :  { %2320 = vmatpush1.bf16.msra.mxu1 %v4826_v8  ;;  %2406 = vmatpush1.bf16.msra.mxu0 %v4828_v9  ;;  %v853_v8 = vld [vmem:[#allocation5 + $0x440] sm:$0xff] }
 0x14f   :  { %2321 = vmatprep.subr.bf16.mxu1 %v4835_v10  ;;  %2407 = vmatprep.subr.bf16.mxu0 %v4837_v11  ;;  %v857_v11 = vld [vmem:[#allocation5 + $0x460] sm:$0xff] }
 0x150   :  { %v4866_v25 = vcombine.low %v853_v8, %v857_v11 }
 0x152   :  { %2322 = vmatpush1.bf16.msra.mxu1 %v4834_v12  ;;  %2408 = vmatpush1.bf16.msra.mxu0 %v4836_v13  ;;  %v854_v12 = vld [vmem:[#allocation5 + $0x448] sm:$0xff] }
 0x153   :  { %2323 = vmatprep.subr.bf16.mxu1 %v4843_v20  ;;  %2409 = vmatprep.subr.bf16.mxu0 %v4845_v24  ;;  %v858_v13 = vld [vmem:[#allocation5 + $0x468] sm:$0xff]  ;;  %v4867_v20 = vcombine.high %v853_v8, %v857_v11  ;;  %v913_v8 = vld [vmem:[#allocation5 + $0x620] sm:$0xff] }
 0x154   :  { %v4869_v21 = vcombine.high %v854_v12, %v858_v13  ;;  %v866_v24 = vld [vmem:[#allocation5 + $0x4a8] sm:$0xff]  ;;  %v4868_v26 = vcombine.low %v854_v12, %v858_v13 }
 0x155   :  { %v910_v11 = vld [vmem:[#allocation5 + $0x608] sm:$0xff] }
 0x156   :  { %2324 = vmatpush1.bf16.msra.mxu1 %v4842_v22  ;;  %2410 = vmatpush1.bf16.msra.mxu0 %v4844_v23  ;;  %v865_v22 = vld [vmem:[#allocation5 + $0x4a0] sm:$0xff]  ;;  %v862_v23 = vld [vmem:[#allocation5 + $0x488] sm:$0xff] }
 0x157   :  { %2325 = vmatprep.subr.bf16.mxu1 %v4851_v28  ;;  %2411 = vmatprep.subr.bf16.mxu0 %v4853_v32  ;;  %v4875_v27 = vcombine.high %v861_v19, %v865_v22  ;;  %v4877_v28 = vcombine.high %v862_v23, %v866_v24  ;;  %v874_v32 = vld [vmem:[#allocation5 + $0x4e8] sm:$0xff]  ;;  %v4874_v33 = vcombine.low %v861_v19, %v865_v22  ;;  %v917_v22 = vld [vmem:[#allocation5 + $0x640] sm:$0xff] }
 0x158   :  { %v4876_v34 = vcombine.low %v862_v23, %v866_v24  ;;  %v914_v12 = vld [vmem:[#allocation5 + $0x628] sm:$0xff]  ;;  %v921_v23 = vld [vmem:[#allocation5 + $0x660] sm:$0xff] }
 0x159   :  { %v918_v24 = vld [vmem:[#allocation5 + $0x648] sm:$0xff] }
 0x15a   :  { %2326 = vmatpush1.bf16.msra.mxu1 %v4850_v30  ;;  %2412 = vmatpush1.bf16.msra.mxu0 %v4852_v31  ;;  %v873_v30 = vld [vmem:[#allocation5 + $0x4e0] sm:$0xff]  ;;  %v870_v31 = vld [vmem:[#allocation5 + $0x4c8] sm:$0xff] }
 0x15b   :  { %2338 = vmatprep.subr.bf16.mxu1 %v4859_v36  ;;  %2424 = vmatprep.subr.bf16.mxu0 %v4861_v40  ;;  %v4883_v35 = vcombine.high %v869_v29, %v873_v30  ;;  %v4885_v36 = vcombine.high %v870_v31, %v874_v32  ;;  %v882_v40 = vld [vmem:[#allocation5 + $0x528] sm:$0xff]  ;;  %v4882_v42 = vcombine.low %v869_v29, %v873_v30  ;;  %v925_v30 = vld [vmem:[#allocation5 + $0x680] sm:$0xff] }
 0x1f0   :  { %v653_v48 = vpop.f32.mrb[0].mxu1  ;;  %v696_v49 = vpop.f32.mrb[4].mxu0 }
 0x1f1   :  { %v654_v50 = vadd.f32 %v653_v48, %v282_v44  ;;  %v697_v51 = vadd.f32 %v696_v49, %v290_v45  ;;  %v655_v52 = vpop.f32.mrb[1].mxu1  ;;  %v698_v53 = vpop.f32.mrb[5].mxu0  ;;  %v889_v48 = vld [vmem:[#allocation5 + $0x560] sm:$0xff]  ;;  %v886_v49 = vld [vmem:[#allocation5 + $0x548] sm:$0xff] }
 0x1f2   :  { %v656_v54 = vadd.f32 %v655_v52, %v286_v46  ;;  %v699_v55 = vadd.f32 %v698_v53, %v294_v47  ;;  %v657_v56 = vpop.f32.mrb[2].mxu1  ;;  %v700_v57 = vpop.f32.mrb[6].mxu0 }
 0x1f3   :  { %v658_v58 = vadd.f32 %v657_v56, %v282_v44  ;;  %v701_v59 = vadd.f32 %v700_v57, %v290_v45  ;;  %v659_v60 = vpop.f32.mrb[3].mxu1  ;;  %v702_v61 = vpop.f32.mrb[7].mxu0  ;;  %v705_v0 = vmax.f32 %v654_v50, 0.0  ;;  %v707_v1 = vmax.f32 %v697_v51, 0.0  ;;  %v890_v50 = vld [vmem:[#allocation5 + $0x568] sm:$0xff]  ;;  %v897_v56 = vld [vmem:[#allocation5 + $0x5a0] sm:$0xff] }
 0x1f4   :  { %v660_v62 = vadd.f32 %v659_v60, %v286_v46  ;;  %v703_v63 = vadd.f32 %v702_v61, %v294_v47  ;;  %v706_v4 = vmax.f32 %v656_v54, 0.0  ;;  %v708_v5 = vmax.f32 %v699_v55, 0.0  ;;  %v885_v47 = vld [vmem:[#allocation5 + $0x540] sm:$0xff]  ;;  %v894_v57 = vld [vmem:[#allocation5 + $0x588] sm:$0xff] }
 0x1f5   :  { %v709_v2 = vmax.f32 %v658_v58, 0.0  ;;  %v711_v3 = vmax.f32 %v701_v59, 0.0  ;;  %v4884_v44 = vcombine.low %v870_v31, %v874_v32  ;;  %v4899_v53 = vcombine.high %v885_v47, %v889_v48  ;;  %v893_v55 = vld [vmem:[#allocation5 + $0x580] sm:$0xff]  ;;  %v898_v58 = vld [vmem:[#allocation5 + $0x5a8] sm:$0xff] }
 0x1f6   :  { %v710_v6 = vmax.f32 %v660_v62, 0.0  ;;  %v712_v7 = vmax.f32 %v703_v63, 0.0  ;;  %v4901_v54 = vcombine.high %v886_v49, %v890_v50  ;;  %v4898_v59 = vcombine.low %v885_v47, %v889_v48  ;;  %v901_v63 = vld [vmem:[#allocation5 + $0x5c0] sm:$0xff]  ;;  %v926_v32 = vld [vmem:[#allocation5 + $0x688] sm:$0xff] }
 0x1f7   :  { %v6038_v9 = vpack.c.bf16 %v709_v2, %v705_v0  ;;  %v6040_v10 = vpack.c.bf16 %v711_v3, %v707_v1  ;;  %v4900_v60 = vcombine.low %v886_v49, %v890_v50  ;;  %v4907_v61 = vcombine.high %v893_v55, %v897_v56  ;;  %v905_v0 = vld [vmem:[#allocation5 + $0x5e0] sm:$0xff]  ;;  %v902_v1 = vld [vmem:[#allocation5 + $0x5c8] sm:$0xff] }
 0x1f8   :  { %v6042_v14 = vpack.c.bf16 %v710_v6, %v706_v4  ;;  %v6044_v17 = vpack.c.bf16 %v712_v7, %v708_v5  ;;  %v4909_v62 = vcombine.high %v894_v57, %v898_v58  ;;  %v906_v2 = vld [vmem:[#allocation5 + $0x5e8] sm:$0xff]  ;;  %v4906_v3 = vcombine.low %v893_v55, %v897_v56  ;;  %v909_v7 = vld [vmem:[#allocation5 + $0x600] sm:$0xff] }
 0x1f9   :  { %v4908_v4 = vcombine.low %v894_v57, %v898_v58  ;;  %v4915_v5 = vcombine.high %v901_v63, %v905_v0  ;;  %v4917_v6 = vcombine.high %v902_v1, %v906_v2  ;;  %v4914_v13 = vcombine.low %v901_v63, %v905_v0  ;;  %v929_v31 = vld [vmem:[#allocation5 + $0x6a0] sm:$0xff]  ;;  %v942_v50 = vld [vmem:[#allocation5 + $0x708] sm:$0xff] }
 0x1fa   :  { %2327 = vmatprep.mubr.bf16.mxu1 %v6042_v14  ;;  %2413 = vmatprep.mubr.bf16.mxu0 %v6042_v14  ;;  %v4916_v19 = vcombine.low %v902_v1, %v906_v2  ;;  %v941_v48 = vld [vmem:[#allocation5 + $0x700] sm:$0xff]  ;;  %v950_v58 = vld [vmem:[#allocation5 + $0x748] sm:$0xff] }
 0x1fb   :  { %2328 = vmatmul.mubr.bf16.vlgmr.msra.gmra.mrb[4].mxu1 %v6038_v9  ;;  %2414 = vmatmul.mubr.bf16.vlgmr.msra.gmra.mrb[8].mxu0 %v6038_v9  ;;  %v945_v49 = vld [vmem:[#allocation5 + $0x720] sm:$0xff]  ;;  %v958_v2 = vld [vmem:[#allocation5 + $0x788] sm:$0xff] }
 0x1fc   :  { %2339 = vmatpush1.bf16.msra.mxu1 %v4858_v38  ;;  %2425 = vmatpush1.bf16.msra.mxu0 %v4860_v39  ;;  %v881_v38 = vld [vmem:[#allocation5 + $0x520] sm:$0xff]  ;;  %v878_v39 = vld [vmem:[#allocation5 + $0x508] sm:$0xff] }
 0x1fd   :  { %2370 = vmatprep.mubr.bf16.mxu1 %v6044_v17  ;;  %2456 = vmatprep.mubr.bf16.mxu0 %v6044_v17  ;;  %v4891_v45 = vcombine.high %v877_v37, %v881_v38  ;;  %v4893_v46 = vcombine.high %v878_v39, %v882_v40  ;;  %v4890_v51 = vcombine.low %v877_v37, %v881_v38  ;;  %v933_v38 = vld [vmem:[#allocation5 + $0x6c0] sm:$0xff] }
 0x1fe   :  { %2340 = vmatprep.subr.bf16.mxu1 %v4867_v20  ;;  %2426 = vmatprep.subr.bf16.mxu0 %v4869_v21  ;;  %v4892_v52 = vcombine.low %v878_v39, %v882_v40  ;;  %v4923_v20 = vcombine.high %v909_v7, %v913_v8  ;;  %v4925_v21 = vcombine.high %v910_v11, %v914_v12  ;;  %v937_v39 = vld [vmem:[#allocation5 + $0x6e0] sm:$0xff]  ;;  %v934_v40 = vld [vmem:[#allocation5 + $0x6c8] sm:$0xff] }
 0x1ff   :  { %v949_v56 = vld [vmem:[#allocation5 + $0x740] sm:$0xff] }
 0x200   :  { %2341 = vmatpush1.bf16.msra.mxu1 %v4866_v25  ;;  %2427 = vmatpush1.bf16.msra.mxu0 %v4868_v26  ;;  %v922_v25 = vld [vmem:[#allocation5 + $0x668] sm:$0xff]  ;;  %v4922_v26 = vcombine.low %v909_v7, %v913_v8  ;;  %v953_v57 = vld [vmem:[#allocation5 + $0x760] sm:$0xff] }
 0x201   :  { %2342 = vmatprep.subr.bf16.mxu1 %v4875_v27  ;;  %2428 = vmatprep.subr.bf16.mxu0 %v4877_v28  ;;  %v4924_v27 = vcombine.low %v910_v11, %v914_v12  ;;  %v4931_v28 = vcombine.high %v917_v22, %v921_v23  ;;  %v4933_v29 = vcombine.high %v918_v24, %v922_v25  ;;  %v957_v0 = vld [vmem:[#allocation5 + $0x780] sm:$0xff]  ;;  %v966_v12 = vld [vmem:[#allocation5 + $0x7c8] sm:$0xff] }
 0x202   :  { %v961_v1 = vld [vmem:[#allocation5 + $0x7a0] sm:$0xff] }
 0x203   :  { %v965_v8 = vld [vmem:[#allocation5 + $0x7c0] sm:$0xff] }
 0x204   :  { %2343 = vmatpush1.bf16.msra.mxu1 %v4874_v33  ;;  %2429 = vmatpush1.bf16.msra.mxu0 %v4876_v34  ;;  %v930_v33 = vld [vmem:[#allocation5 + $0x6a8] sm:$0xff]  ;;  %v4930_v34 = vcombine.low %v917_v22, %v921_v23  ;;  %v969_v11 = vld [vmem:[#allocation5 + $0x7e0] sm:$0xff]  ;;  %v719_v23 = vld [vmem:[#allocation5 + $0x10] sm:$0xff] }
 0x205   :  { %2344 = vmatprep.subr.bf16.mxu1 %v4883_v35  ;;  %2430 = vmatprep.subr.bf16.mxu0 %v4885_v36  ;;  %v4932_v35 = vcombine.low %v918_v24, %v922_v25  ;;  %v4939_v36 = vcombine.high %v925_v30, %v929_v31  ;;  %v4941_v37 = vcombine.high %v926_v32, %v930_v33  ;;  %v723_v24 = vld [vmem:[#allocation5 + $0x30] sm:$0xff]  ;;  %v720_v25 = vld [vmem:[#allocation5 + $0x18] sm:$0xff] }
 0x208   :  { %2345 = vmatpush1.bf16.msra.mxu1 %v4882_v42  ;;  %2431 = vmatpush1.bf16.msra.mxu0 %v4884_v44  ;;  %v938_v42 = vld [vmem:[#allocation5 + $0x6e8] sm:$0xff]  ;;  %v4938_v44 = vcombine.low %v925_v30, %v929_v31  ;;  %v727_v31 = vld [vmem:[#allocation5 + $0x50] sm:$0xff] }
 0x209   :  { %2346 = vmatprep.subr.bf16.mxu1 %v4891_v45  ;;  %2432 = vmatprep.subr.bf16.mxu0 %v4893_v46  ;;  %v4940_v45 = vcombine.low %v926_v32, %v930_v33  ;;  %v4947_v46 = vcombine.high %v933_v38, %v937_v39  ;;  %v4949_v47 = vcombine.high %v934_v40, %v938_v42  ;;  %v731_v32 = vld [vmem:[#allocation5 + $0x70] sm:$0xff]  ;;  %v728_v33 = vld [vmem:[#allocation5 + $0x58] sm:$0xff] }
 0x20c   :  { %2347 = vmatpush1.bf16.msra.mxu1 %v4890_v51  ;;  %2433 = vmatpush1.bf16.msra.mxu0 %v4892_v52  ;;  %v946_v51 = vld [vmem:[#allocation5 + $0x728] sm:$0xff]  ;;  %v4946_v52 = vcombine.low %v933_v38, %v937_v39  ;;  %v735_v39 = vld [vmem:[#allocation5 + $0x90] sm:$0xff] }
 0x20d   :  { %2348 = vmatprep.subr.bf16.mxu1 %v4899_v53  ;;  %2434 = vmatprep.subr.bf16.mxu0 %v4901_v54  ;;  %v4948_v53 = vcombine.low %v934_v40, %v938_v42  ;;  %v4955_v54 = vcombine.high %v941_v48, %v945_v49  ;;  %v4957_v55 = vcombine.high %v942_v50, %v946_v51  ;;  %v739_v40 = vld [vmem:[#allocation5 + $0xb0] sm:$0xff]  ;;  %v736_v42 = vld [vmem:[#allocation5 + $0x98] sm:$0xff] }
 0x210   :  { %2349 = vmatpush1.bf16.msra.mxu1 %v4898_v59  ;;  %2435 = vmatpush1.bf16.msra.mxu0 %v4900_v60  ;;  %v954_v59 = vld [vmem:[#allocation5 + $0x768] sm:$0xff]  ;;  %v4954_v60 = vcombine.low %v941_v48, %v945_v49  ;;  %v743_v49 = vld [vmem:[#allocation5 + $0xd0] sm:$0xff] }
 0x211   :  { %2350 = vmatprep.subr.bf16.mxu1 %v4907_v61  ;;  %2436 = vmatprep.subr.bf16.mxu0 %v4909_v62  ;;  %v4956_v61 = vcombine.low %v942_v50, %v946_v51  ;;  %v4963_v62 = vcombine.high %v949_v56, %v953_v57  ;;  %v4965_v63 = vcombine.high %v950_v58, %v954_v59  ;;  %v747_v50 = vld [vmem:[#allocation5 + $0xf0] sm:$0xff]  ;;  %v744_v51 = vld [vmem:[#allocation5 + $0xd8] sm:$0xff] }
 0x214   :  { %2351 = vmatpush1.bf16.msra.mxu1 %v4906_v3  ;;  %2437 = vmatpush1.bf16.msra.mxu0 %v4908_v4  ;;  %v962_v3 = vld [vmem:[#allocation5 + $0x7a8] sm:$0xff]  ;;  %v4962_v4 = vcombine.low %v949_v56, %v953_v57  ;;  %v751_v57 = vld [vmem:[#allocation5 + $0x110] sm:$0xff] }
 0x215   :  { %2352 = vmatprep.subr.bf16.mxu1 %v4915_v5  ;;  %2438 = vmatprep.subr.bf16.mxu0 %v4917_v6  ;;  %v4964_v5 = vcombine.low %v950_v58, %v954_v59  ;;  %v4971_v6 = vcombine.high %v957_v0, %v961_v1  ;;  %v4973_v7 = vcombine.high %v958_v2, %v962_v3  ;;  %v755_v58 = vld [vmem:[#allocation5 + $0x130] sm:$0xff]  ;;  %v756_v59 = vld [vmem:[#allocation5 + $0x138] sm:$0xff] }
 0x218   :  { %2353 = vmatpush1.bf16.msra.mxu1 %v4914_v13  ;;  %2439 = vmatpush1.bf16.msra.mxu0 %v4916_v19  ;;  %v970_v13 = vld [vmem:[#allocation5 + $0x7e8] sm:$0xff]  ;;  %v4970_v19 = vcombine.low %v957_v0, %v961_v1  ;;  %v759_v0 = vld [vmem:[#allocation5 + $0x150] sm:$0xff] }
 0x219   :  { %2354 = vmatprep.subr.bf16.mxu1 %v4923_v20  ;;  %2440 = vmatprep.subr.bf16.mxu0 %v4925_v21  ;;  %v4972_v20 = vcombine.low %v958_v2, %v962_v3  ;;  %v4979_v21 = vcombine.high %v965_v8, %v969_v11  ;;  %v4981_v22 = vcombine.high %v966_v12, %v970_v13  ;;  %v763_v1 = vld [vmem:[#allocation5 + $0x170] sm:$0xff]  ;;  %v760_v2 = vld [vmem:[#allocation5 + $0x158] sm:$0xff] }
 0x21a   :  { %v764_v3 = vld [vmem:[#allocation5 + $0x178] sm:$0xff] }
 0x21c   :  { %2355 = vmatpush1.bf16.msra.mxu1 %v4922_v26  ;;  %2441 = vmatpush1.bf16.msra.mxu0 %v4924_v27  ;;  %v724_v26 = vld [vmem:[#allocation5 + $0x38] sm:$0xff]  ;;  %v4978_v27 = vcombine.low %v965_v8, %v969_v11  ;;  %v767_v8 = vld [vmem:[#allocation5 + $0x190] sm:$0xff] }
 0x21d   :  { %2356 = vmatprep.subr.bf16.mxu1 %v4931_v28  ;;  %2442 = vmatprep.subr.bf16.mxu0 %v4933_v29  ;;  %v4980_v28 = vcombine.low %v966_v12, %v970_v13  ;;  %v4735_v29 = vcombine.high %v719_v23, %v723_v24  ;;  %v4737_v30 = vcombine.high %v720_v25, %v724_v26  ;;  %v771_v11 = vld [vmem:[#allocation5 + $0x1b0] sm:$0xff]  ;;  %v768_v12 = vld [vmem:[#allocation5 + $0x198] sm:$0xff] }
 0x21e   :  { %v772_v13 = vld [vmem:[#allocation5 + $0x1b8] sm:$0xff] }
 0x220   :  { %2357 = vmatpush1.bf16.msra.mxu1 %v4930_v34  ;;  %2443 = vmatpush1.bf16.msra.mxu0 %v4932_v35  ;;  %v732_v34 = vld [vmem:[#allocation5 + $0x78] sm:$0xff]  ;;  %v4734_v35 = vcombine.low %v719_v23, %v723_v24  ;;  %v775_v23 = vld [vmem:[#allocation5 + $0x1d0] sm:$0xff] }
 0x221   :  { %2358 = vmatprep.subr.bf16.mxu1 %v4939_v36  ;;  %2444 = vmatprep.subr.bf16.mxu0 %v4941_v37  ;;  %v4736_v36 = vcombine.low %v720_v25, %v724_v26  ;;  %v4743_v37 = vcombine.high %v727_v31, %v731_v32  ;;  %v4745_v38 = vcombine.high %v728_v33, %v732_v34  ;;  %v779_v24 = vld [vmem:[#allocation5 + $0x1f0] sm:$0xff]  ;;  %v776_v25 = vld [vmem:[#allocation5 + $0x1d8] sm:$0xff] }
 0x222   :  { %v780_v26 = vld [vmem:[#allocation5 + $0x1f8] sm:$0xff] }
 0x224   :  { %2359 = vmatpush1.bf16.msra.mxu1 %v4938_v44  ;;  %2445 = vmatpush1.bf16.msra.mxu0 %v4940_v45  ;;  %v740_v44 = vld [vmem:[#allocation5 + $0xb8] sm:$0xff]  ;;  %v4742_v45 = vcombine.low %v727_v31, %v731_v32  ;;  %v783_v31 = vld [vmem:[#allocation5 + $0x210] sm:$0xff] }
 0x225   :  { %2360 = vmatprep.subr.bf16.mxu1 %v4947_v46  ;;  %2446 = vmatprep.subr.bf16.mxu0 %v4949_v47  ;;  %v4744_v46 = vcombine.low %v728_v33, %v732_v34  ;;  %v4751_v47 = vcombine.high %v735_v39, %v739_v40  ;;  %v4753_v48 = vcombine.high %v736_v42, %v740_v44  ;;  %v787_v32 = vld [vmem:[#allocation5 + $0x230] sm:$0xff]  ;;  %v784_v33 = vld [vmem:[#allocation5 + $0x218] sm:$0xff] }
 0x226   :  { %v788_v34 = vld [vmem:[#allocation5 + $0x238] sm:$0xff] }
 0x228   :  { %2361 = vmatpush1.bf16.msra.mxu1 %v4946_v52  ;;  %2447 = vmatpush1.bf16.msra.mxu0 %v4948_v53  ;;  %v748_v52 = vld [vmem:[#allocation5 + $0xf8] sm:$0xff]  ;;  %v4750_v53 = vcombine.low %v735_v39, %v739_v40  ;;  %v791_v39 = vld [vmem:[#allocation5 + $0x250] sm:$0xff] }
 0x229   :  { %2362 = vmatprep.subr.bf16.mxu1 %v4955_v54  ;;  %2448 = vmatprep.subr.bf16.mxu0 %v4957_v55  ;;  %v4752_v54 = vcombine.low %v736_v42, %v740_v44  ;;  %v4759_v55 = vcombine.high %v743_v49, %v747_v50  ;;  %v4761_v56 = vcombine.high %v744_v51, %v748_v52  ;;  %v795_v40 = vld [vmem:[#allocation5 + $0x270] sm:$0xff]  ;;  %v792_v42 = vld [vmem:[#allocation5 + $0x258] sm:$0xff] }
 0x22a   :  { %v796_v44 = vld [vmem:[#allocation5 + $0x278] sm:$0xff] }
 0x22c   :  { %2363 = vmatpush1.bf16.msra.mxu1 %v4954_v60  ;;  %2449 = vmatpush1.bf16.msra.mxu0 %v4956_v61  ;;  %v4758_v60 = vcombine.low %v743_v49, %v747_v50  ;;  %v4760_v61 = vcombine.low %v744_v51, %v748_v52  ;;  %v799_v49 = vld [vmem:[#allocation5 + $0x290] sm:$0xff]  ;;  %v800_v51 = vld [vmem:[#allocation5 + $0x298] sm:$0xff] }
 0x22d   :  { %2364 = vmatprep.subr.bf16.mxu1 %v4963_v62  ;;  %2450 = vmatprep.subr.bf16.mxu0 %v4965_v63  ;;  %v4767_v62 = vcombine.high %v751_v57, %v755_v58  ;;  %v803_v50 = vld [vmem:[#allocation5 + $0x2b0] sm:$0xff]  ;;  %v804_v52 = vld [vmem:[#allocation5 + $0x2b8] sm:$0xff] }
 0x230   :  { %2365 = vmatpush1.bf16.msra.mxu1 %v4962_v4  ;;  %2451 = vmatpush1.bf16.msra.mxu0 %v4964_v5  ;;  %v4766_v4 = vcombine.low %v751_v57, %v755_v58  ;;  %v807_v57 = vld [vmem:[#allocation5 + $0x2d0] sm:$0xff] }
 0x231   :  { %2366 = vmatprep.subr.bf16.mxu1 %v4971_v6  ;;  %2452 = vmatprep.subr.bf16.mxu0 %v4973_v7  ;;  %v4775_v6 = vcombine.high %v759_v0, %v763_v1  ;;  %v4777_v7 = vcombine.high %v760_v2, %v764_v3  ;;  %v811_v58 = vld [vmem:[#allocation5 + $0x2f0] sm:$0xff] }
 0x234   :  { %2367 = vmatpush1.bf16.msra.mxu1 %v4970_v19  ;;  %2453 = vmatpush1.bf16.msra.mxu0 %v4972_v20  ;;  %v4774_v19 = vcombine.low %v759_v0, %v763_v1  ;;  %v4776_v20 = vcombine.low %v760_v2, %v764_v3  ;;  %v815_v0 = vld [vmem:[#allocation5 + $0x310] sm:$0xff]  ;;  %v816_v2 = vld [vmem:[#allocation5 + $0x318] sm:$0xff] }
 0x235   :  { %2368 = vmatprep.subr.bf16.mxu1 %v4979_v21  ;;  %2454 = vmatprep.subr.bf16.mxu0 %v4981_v22  ;;  %v4783_v21 = vcombine.high %v767_v8, %v771_v11  ;;  %v4785_v22 = vcombine.high %v768_v12, %v772_v13  ;;  %v819_v1 = vld [vmem:[#allocation5 + $0x330] sm:$0xff]  ;;  %v820_v3 = vld [vmem:[#allocation5 + $0x338] sm:$0xff] }
 0x238   :  { %2369 = vmatpush1.bf16.msra.mxu1 %v4978_v27  ;;  %2455 = vmatpush1.bf16.msra.mxu0 %v4980_v28  ;;  %v4782_v27 = vcombine.low %v767_v8, %v771_v11  ;;  %v4784_v28 = vcombine.low %v768_v12, %v772_v13  ;;  %v823_v8 = vld [vmem:[#allocation5 + $0x350] sm:$0xff]  ;;  %v824_v12 = vld [vmem:[#allocation5 + $0x358] sm:$0xff] }
 0x239   :  { %2467 = vmatprep.subr.bf16.mxu1 %v4735_v29  ;;  %2553 = vmatprep.subr.bf16.mxu0 %v4737_v30  ;;  %v4791_v29 = vcombine.high %v775_v23, %v779_v24  ;;  %v4793_v30 = vcombine.high %v776_v25, %v780_v26  ;;  %v827_v11 = vld [vmem:[#allocation5 + $0x370] sm:$0xff]  ;;  %v828_v13 = vld [vmem:[#allocation5 + $0x378] sm:$0xff] }
 0x23b   :  { %2371 = vmatmul.mubr.bf16.vlgmr.msra.gmra.mrb[4].mxu1 %v6040_v10  ;;  %2457 = vmatmul.mubr.bf16.vlgmr.msra.gmra.mrb[8].mxu0 %v6040_v10 }
 0x23c   :  { %2468 = vmatpush1.bf16.msra.mxu1 %v4734_v35  ;;  %2499 = vmatprep.mubr.bf16.mxu1 %v6042_v14  ;;  %v4790_v35 = vcombine.low %v775_v23, %v779_v24  ;;  %v831_v23 = vld [vmem:[#allocation5 + $0x390] sm:$0xff] }
 0x23d   :  { %2554 = vmatpush1.bf16.msra.mxu0 %v4736_v36  ;;  %2585 = vmatprep.mubr.bf16.mxu0 %v6042_v14  ;;  %v752_v14 = vld [vmem:[#allocation5 + $0x118] sm:$0xff]  ;;  %v4792_v36 = vcombine.low %v776_v25, %v780_v26  ;;  %v835_v24 = vld [vmem:[#allocation5 + $0x3b0] sm:$0xff] }
 0x23e   :  { %2469 = vmatprep.subr.bf16.mxu1 %v4743_v37  ;;  %2555 = vmatprep.subr.bf16.mxu0 %v4745_v38  ;;  %v4769_v63 = vcombine.high %v752_v14, %v756_v59  ;;  %v4768_v5 = vcombine.low %v752_v14, %v756_v59  ;;  %v4799_v37 = vcombine.high %v783_v31, %v787_v32  ;;  %v808_v14 = vld [vmem:[#allocation5 + $0x2d8] sm:$0xff] }
 0x23f   :  { %v4801_v38 = vcombine.high %v784_v33, %v788_v34  ;;  %v812_v59 = vld [vmem:[#allocation5 + $0x2f8] sm:$0xff] }
 0x240   :  { %2470 = vmatpush1.bf16.msra.mxu1 %v4742_v45  ;;  %v4798_v45 = vcombine.low %v783_v31, %v787_v32  ;;  %v832_v25 = vld [vmem:[#allocation5 + $0x398] sm:$0xff]  ;;  %v839_v31 = vld [vmem:[#allocation5 + $0x3d0] sm:$0xff] }
 0x241   :  { %2556 = vmatpush1.bf16.msra.mxu0 %v4744_v46  ;;  %2471 = vmatprep.subr.bf16.mxu1 %v4751_v47  ;;  %v4800_v46 = vcombine.low %v784_v33, %v788_v34  ;;  %v4807_v47 = vcombine.high %v791_v39, %v795_v40  ;;  %v836_v26 = vld [vmem:[#allocation5 + $0x3b8] sm:$0xff]  ;;  %v843_v32 = vld [vmem:[#allocation5 + $0x3f0] sm:$0xff] }
 0x242   :  { %2557 = vmatprep.subr.bf16.mxu0 %v4753_v48  ;;  %v4809_v48 = vcombine.high %v792_v42, %v796_v44  ;;  %v840_v33 = vld [vmem:[#allocation5 + $0x3d8] sm:$0xff] }
 0x243   :  { %v844_v34 = vld [vmem:[#allocation5 + $0x3f8] sm:$0xff] }
 0x244   :  { %2472 = vmatpush1.bf16.msra.mxu1 %v4750_v53  ;;  %v4806_v53 = vcombine.low %v791_v39, %v795_v40  ;;  %v847_v39 = vld [vmem:[#allocation5 + $0x410] sm:$0xff] }
 0x245   :  { %2558 = vmatpush1.bf16.msra.mxu0 %v4752_v54  ;;  %2473 = vmatprep.subr.bf16.mxu1 %v4759_v55  ;;  %v4808_v54 = vcombine.low %v792_v42, %v796_v44  ;;  %v4815_v55 = vcombine.high %v799_v49, %v803_v50  ;;  %v851_v40 = vld [vmem:[#allocation5 + $0x430] sm:$0xff]  ;;  %v848_v42 = vld [vmem:[#allocation5 + $0x418] sm:$0xff] }
 0x246   :  { %2559 = vmatprep.subr.bf16.mxu0 %v4761_v56  ;;  %v4817_v56 = vcombine.high %v800_v51, %v804_v52  ;;  %v852_v44 = vld [vmem:[#allocation5 + $0x438] sm:$0xff] }
 0x248   :  { %2474 = vmatpush1.bf16.msra.mxu1 %v4758_v60  ;;  %v4814_v60 = vcombine.low %v799_v49, %v803_v50  ;;  %v855_v49 = vld [vmem:[#allocation5 + $0x450] sm:$0xff] }
 0x249   :  { %2560 = vmatpush1.bf16.msra.mxu0 %v4760_v61  ;;  %2475 = vmatprep.subr.bf16.mxu1 %v4767_v62  ;;  %v4816_v61 = vcombine.low %v800_v51, %v804_v52  ;;  %v4823_v62 = vcombine.high %v807_v57, %v811_v58  ;;  %v859_v50 = vld [vmem:[#allocation5 + $0x470] sm:$0xff]  ;;  %v4862_v51 = vcombine.low %v847_v39, %v851_v40  ;;  %v856_v52 = vld [vmem:[#allocation5 + $0x458] sm:$0xff] }
 0x24a   :  { %2561 = vmatprep.subr.bf16.mxu0 %v4769_v63  ;;  %v4825_v63 = vcombine.high %v808_v14, %v812_v59 }
 0x24c   :  { %2476 = vmatpush1.bf16.msra.mxu1 %v4766_v4  ;;  %v4822_v4 = vcombine.low %v807_v57, %v811_v58  ;;  %v867_v57 = vld [vmem:[#allocation5 + $0x4b0] sm:$0xff] }
 0x24d   :  { %2562 = vmatpush1.bf16.msra.mxu0 %v4768_v5  ;;  %2477 = vmatprep.subr.bf16.mxu1 %v4775_v6  ;;  %v4824_v5 = vcombine.low %v808_v14, %v812_v59  ;;  %v4831_v6 = vcombine.high %v815_v0, %v819_v1  ;;  %v864_v14 = vld [vmem:[#allocation5 + $0x498] sm:$0xff] }
 0x24e   :  { %2563 = vmatprep.subr.bf16.mxu0 %v4777_v7  ;;  %v4833_v7 = vcombine.high %v816_v2, %v820_v3  ;;  %v868_v59 = vld [vmem:[#allocation5 + $0x4b8] sm:$0xff] }
 0x250   :  { %2478 = vmatpush1.bf16.msra.mxu1 %v4774_v19  ;;  %v4830_v19 = vcombine.low %v815_v0, %v819_v1  ;;  %v871_v0 = vld [vmem:[#allocation5 + $0x4d0] sm:$0xff] }
 0x251   :  { %2564 = vmatpush1.bf16.msra.mxu0 %v4776_v20  ;;  %2479 = vmatprep.subr.bf16.mxu1 %v4783_v21  ;;  %v4832_v20 = vcombine.low %v816_v2, %v820_v3  ;;  %v4839_v21 = vcombine.high %v823_v8, %v827_v11  ;;  %v875_v1 = vld [vmem:[#allocation5 + $0x4f0] sm:$0xff]  ;;  %v872_v2 = vld [vmem:[#allocation5 + $0x4d8] sm:$0xff] }
 0x252   :  { %2565 = vmatprep.subr.bf16.mxu0 %v4785_v22  ;;  %v4841_v22 = vcombine.high %v824_v12, %v828_v13  ;;  %v876_v3 = vld [vmem:[#allocation5 + $0x4f8] sm:$0xff] }
 0x254   :  { %2480 = vmatpush1.bf16.msra.mxu1 %v4782_v27  ;;  %v4838_v27 = vcombine.low %v823_v8, %v827_v11  ;;  %v883_v8 = vld [vmem:[#allocation5 + $0x530] sm:$0xff]  ;;  %v880_v11 = vld [vmem:[#allocation5 + $0x518] sm:$0xff] }
 0x255   :  { %2566 = vmatpush1.bf16.msra.mxu0 %v4784_v28  ;;  %2481 = vmatprep.subr.bf16.mxu1 %v4791_v29  ;;  %v4840_v28 = vcombine.low %v824_v12, %v828_v13  ;;  %v4847_v29 = vcombine.high %v831_v23, %v835_v24  ;;  %v884_v12 = vld [vmem:[#allocation5 + $0x538] sm:$0xff]  ;;  %v4888_v13 = vcombine.low %v872_v2, %v876_v3 }
 0x256   :  { %2567 = vmatprep.subr.bf16.mxu0 %v4793_v30  ;;  %v4849_v30 = vcombine.high %v832_v25, %v836_v26 }
 0x258   :  { %2482 = vmatpush1.bf16.msra.mxu1 %v4790_v35  ;;  %v4846_v35 = vcombine.low %v831_v23, %v835_v24  ;;  %v888_v23 = vld [vmem:[#allocation5 + $0x558] sm:$0xff] }
 0x259   :  { %2568 = vmatpush1.bf16.msra.mxu0 %v4792_v36  ;;  %2483 = vmatprep.subr.bf16.mxu1 %v4799_v37  ;;  %v4848_v36 = vcombine.low %v832_v25, %v836_v26  ;;  %v4855_v37 = vcombine.high %v839_v31, %v843_v32  ;;  %v892_v24 = vld [vmem:[#allocation5 + $0x578] sm:$0xff]  ;;  %v4896_v26 = vcombine.low %v880_v11, %v884_v12 }
 0x25a   :  { %2569 = vmatprep.subr.bf16.mxu0 %v4801_v38  ;;  %v4857_v38 = vcombine.high %v840_v33, %v844_v34 }
 0x25c   :  { %2484 = vmatpush1.bf16.msra.mxu1 %v4798_v45  ;;  %v4854_v45 = vcombine.low %v839_v31, %v843_v32  ;;  %v896_v31 = vld [vmem:[#allocation5 + $0x598] sm:$0xff] }
 0x25d   :  { %2570 = vmatpush1.bf16.msra.mxu0 %v4800_v46  ;;  %2485 = vmatprep.subr.bf16.mxu1 %v4807_v47  ;;  %v4856_v46 = vcombine.low %v840_v33, %v844_v34  ;;  %v4863_v47 = vcombine.high %v847_v39, %v851_v40  ;;  %v900_v32 = vld [vmem:[#allocation5 + $0x5b8] sm:$0xff]  ;;  %v4904_v34 = vcombine.low %v888_v23, %v892_v24 }
 0x25e   :  { %2571 = vmatprep.subr.bf16.mxu0 %v4809_v48  ;;  %v4865_v48 = vcombine.high %v848_v42, %v852_v44  ;;  %v904_v39 = vld [vmem:[#allocation5 + $0x5d8] sm:$0xff] }
 0x25f   :  { %v908_v40 = vld [vmem:[#allocation5 + $0x5f8] sm:$0xff] }
 0x260   :  { %2486 = vmatpush1.bf16.msra.mxu1 %v4806_v53  ;;  %v860_v53 = vld [vmem:[#allocation5 + $0x478] sm:$0xff] }
 0x261   :  { %2572 = vmatpush1.bf16.msra.mxu0 %v4808_v54  ;;  %2487 = vmatprep.subr.bf16.mxu1 %v4815_v55  ;;  %v4864_v54 = vcombine.low %v848_v42, %v852_v44  ;;  %v4871_v55 = vcombine.high %v855_v49, %v859_v50  ;;  %v4873_v58 = vcombine.high %v856_v52, %v860_v53 }
 0x262   :  { %2573 = vmatprep.subr.bf16.mxu0 %v4817_v56  ;;  %v863_v56 = vld [vmem:[#allocation5 + $0x490] sm:$0xff]  ;;  %v4912_v44 = vcombine.low %v896_v31, %v900_v32 }
 0x264   :  { %2488 = vmatpush1.bf16.msra.mxu1 %v4814_v60  ;;  %v4870_v60 = vcombine.low %v855_v49, %v859_v50  ;;  %v912_v49 = vld [vmem:[#allocation5 + $0x618] sm:$0xff] }
 0x265   :  { %2574 = vmatpush1.bf16.msra.mxu0 %v4816_v61  ;;  %2489 = vmatprep.subr.bf16.mxu1 %v4823_v62  ;;  %v4872_v61 = vcombine.low %v856_v52, %v860_v53  ;;  %v4879_v62 = vcombine.high %v863_v56, %v867_v57  ;;  %v916_v50 = vld [vmem:[#allocation5 + $0x638] sm:$0xff]  ;;  %v4920_v52 = vcombine.low %v904_v39, %v908_v40 }
 0x266   :  { %2575 = vmatprep.subr.bf16.mxu0 %v4825_v63  ;;  %v4881_v63 = vcombine.high %v864_v14, %v868_v59 }
 0x268   :  { %2490 = vmatpush1.bf16.msra.mxu1 %v4822_v4  ;;  %v4878_v4 = vcombine.low %v863_v56, %v867_v57  ;;  %v923_v56 = vld [vmem:[#allocation5 + $0x670] sm:$0xff]  ;;  %v920_v57 = vld [vmem:[#allocation5 + $0x658] sm:$0xff] }
 0x269   :  { %2576 = vmatpush1.bf16.msra.mxu0 %v4824_v5  ;;  %2491 = vmatprep.subr.bf16.mxu1 %v4831_v6  ;;  %v4887_v5 = vcombine.high %v871_v0, %v875_v1  ;;  %v4889_v6 = vcombine.high %v872_v2, %v876_v3 }
 0x26a   :  { %2577 = vmatprep.subr.bf16.mxu0 %v4833_v7  ;;  %v879_v7 = vld [vmem:[#allocation5 + $0x510] sm:$0xff] }
 0x26b   :  { %v4894_v25 = vcombine.low %v879_v7, %v883_v8 }
 0x26c   :  { %2492 = vmatpush1.bf16.msra.mxu1 %v4830_v19  ;;  %v4895_v19 = vcombine.high %v879_v7, %v883_v8  ;;  %v936_v7 = vld [vmem:[#allocation5 + $0x6d8] sm:$0xff] }
 0x26d   :  { %2578 = vmatpush1.bf16.msra.mxu0 %v4832_v20  ;;  %2493 = vmatprep.subr.bf16.mxu1 %v4839_v21  ;;  %v4897_v20 = vcombine.high %v880_v11, %v884_v12  ;;  %v887_v21 = vld [vmem:[#allocation5 + $0x550] sm:$0xff]  ;;  %v940_v8 = vld [vmem:[#allocation5 + $0x6f8] sm:$0xff] }
 0x26e   :  { %2579 = vmatprep.subr.bf16.mxu0 %v4841_v22  ;;  %v891_v22 = vld [vmem:[#allocation5 + $0x570] sm:$0xff] }
 0x26f   :  { %v4902_v33 = vcombine.low %v887_v21, %v891_v22 }
 0x270   :  { %2494 = vmatpush1.bf16.msra.mxu1 %v4838_v27  ;;  %v4903_v27 = vcombine.high %v887_v21, %v891_v22  ;;  %v944_v21 = vld [vmem:[#allocation5 + $0x718] sm:$0xff] }
 0x271   :  { %2580 = vmatpush1.bf16.msra.mxu0 %v4840_v28  ;;  %2495 = vmatprep.subr.bf16.mxu1 %v4847_v29  ;;  %v4905_v28 = vcombine.high %v888_v23, %v892_v24  ;;  %v895_v29 = vld [vmem:[#allocation5 + $0x590] sm:$0xff]  ;;  %v948_v22 = vld [vmem:[#allocation5 + $0x738] sm:$0xff]  ;;  %v4952_v24 = vcombine.low %v936_v7, %v940_v8 }
 0x272   :  { %2581 = vmatprep.subr.bf16.mxu0 %v4849_v30  ;;  %v899_v30 = vld [vmem:[#allocation5 + $0x5b0] sm:$0xff] }
 0x273   :  { %v4910_v42 = vcombine.low %v895_v29, %v899_v30 }
 0x274   :  { %2496 = vmatpush1.bf16.msra.mxu1 %v4846_v35  ;;  %v4911_v35 = vcombine.high %v895_v29, %v899_v30  ;;  %v952_v29 = vld [vmem:[#allocation5 + $0x758] sm:$0xff] }
 0x275   :  { %2582 = vmatpush1.bf16.msra.mxu0 %v4848_v36  ;;  %2497 = vmatprep.subr.bf16.mxu1 %v4855_v37  ;;  %v4913_v36 = vcombine.high %v896_v31, %v900_v32  ;;  %v903_v37 = vld [vmem:[#allocation5 + $0x5d0] sm:$0xff]  ;;  %v956_v30 = vld [vmem:[#allocation5 + $0x778] sm:$0xff]  ;;  %v4960_v32 = vcombine.low %v944_v21, %v948_v22 }
 0x276   :  { %2583 = vmatprep.subr.bf16.mxu0 %v4857_v38  ;;  %v907_v38 = vld [vmem:[#allocation5 + $0x5f0] sm:$0xff] }
 0x278   :  { %2498 = vmatpush1.bf16.msra.mxu1 %v4854_v45  ;;  %v4919_v45 = vcombine.high %v903_v37, %v907_v38 }
 0x279   :  { %2584 = vmatpush1.bf16.msra.mxu0 %v4856_v46  ;;  %2510 = vmatprep.subr.bf16.mxu1 %v4863_v47  ;;  %v4921_v46 = vcombine.high %v904_v39, %v908_v40  ;;  %v911_v47 = vld [vmem:[#allocation5 + $0x610] sm:$0xff]  ;;  %v4968_v40 = vcombine.low %v952_v29, %v956_v30 }
 0x27a   :  { %2596 = vmatprep.subr.bf16.mxu0 %v4865_v48  ;;  %v915_v48 = vld [vmem:[#allocation5 + $0x630] sm:$0xff] }
 0x27b   :  { %2500 = vmatmul.mubr.bf16.vlgmr.msra.gmra.mrb[8].mxu1 %v6038_v9  ;;  %v4927_v53 = vcombine.high %v911_v47, %v915_v48 }
 0x27c   :  { %2586 = vmatmul.mubr.bf16.vlgmr.msra.gmra.mrb[12].mxu0 %v6038_v9  ;;  %2511 = vmatpush1.bf16.msra.mxu1 %v4862_v51  ;;  %v4880_v9 = vcombine.low %v864_v14, %v868_v59  ;;  %v4918_v51 = vcombine.low %v903_v37, %v907_v38  ;;  %v4926_v14 = vcombine.low %v911_v47, %v915_v48  ;;  %v960_v37 = vld [vmem:[#allocation5 + $0x798] sm:$0xff] }
 0x27d   :  { %2542 = vmatprep.mubr.bf16.mxu1 %v6044_v17  ;;  %2597 = vmatpush1.bf16.msra.mxu0 %v4864_v54  ;;  %v4929_v54 = vcombine.high %v912_v49, %v916_v50  ;;  %v4928_v59 = vcombine.low %v912_v49, %v916_v50  ;;  %v964_v38 = vld [vmem:[#allocation5 + $0x7b8] sm:$0xff] }
 0x27e   :  { %2628 = vmatprep.mubr.bf16.mxu0 %v6044_v17  ;;  %2512 = vmatprep.subr.bf16.mxu1 %v4871_v55  ;;  %v4886_v17 = vcombine.low %v871_v0, %v875_v1  ;;  %v919_v55 = vld [vmem:[#allocation5 + $0x650] sm:$0xff]  ;;  %v928_v0 = vld [vmem:[#allocation5 + $0x698] sm:$0xff]  ;;  %v4976_v50 = vcombine.low %v960_v37, %v964_v38 }
 0x27f   :  { %2598 = vmatprep.subr.bf16.mxu0 %v4873_v58  ;;  %v924_v58 = vld [vmem:[#allocation5 + $0x678] sm:$0xff]  ;;  %v4934_v2 = vcombine.low %v919_v55, %v923_v56 }
 0x280   :  { %2513 = vmatpush1.bf16.msra.mxu1 %v4870_v60  ;;  %v4935_v60 = vcombine.high %v919_v55, %v923_v56  ;;  %v932_v1 = vld [vmem:[#allocation5 + $0x6b8] sm:$0xff]  ;;  %v4936_v3 = vcombine.low %v920_v57, %v924_v58  ;;  %v5419_v55 = vld [vmem:[#allocation7 + $0x4] ss:$16 sps:$4 sm:$0xff]  }
 0x281   :  { %2599 = vmatpush1.bf16.msra.mxu0 %v4872_v61  ;;  %2514 = vmatprep.subr.bf16.mxu1 %v4879_v62  ;;  %v4937_v61 = vcombine.high %v920_v57, %v924_v58  ;;  %v927_v62 = vld [vmem:[#allocation5 + $0x690] sm:$0xff]  ;;  %v4944_v12 = vcombine.low %v928_v0, %v932_v1  ;;  %v968_v47 = vld [vmem:[#allocation5 + $0x7d8] sm:$0xff] }
 0x282   :  { %2600 = vmatprep.subr.bf16.mxu0 %v4881_v63  ;;  %v931_v63 = vld [vmem:[#allocation5 + $0x6b0] sm:$0xff]  ;;  %v972_v48 = vld [vmem:[#allocation5 + $0x7f8] sm:$0xff] }
 0x283   :  { %v4942_v11 = vcombine.low %v927_v62, %v931_v63  ;;  %v5422_v56 = vld [vmem:[#allocation7 + $0xc] ss:$16 sps:$4 sm:$0xff]   ;;  %v5417_v57 = vld [vmem:[#allocation7] ss:$16 sps:$4 sm:$0xff]   ;;  %v5420_v58 = vld [vmem:[#allocation7 + $0x8] ss:$16 sps:$4 sm:$0xff]  }
 0x284   :  { %2515 = vmatpush1.bf16.msra.mxu1 %v4878_v4  ;;  %v4943_v4 = vcombine.high %v927_v62, %v931_v63  ;;  %v5431_v62 = vld [vmem:[#allocation7 + $0x44] ss:$16 sps:$4 sm:$0xff]   ;;  %v5434_v63 = vld [vmem:[#allocation7 + $0x4c] ss:$16 sps:$4 sm:$0xff]  }
 0x285   :  { %2601 = vmatpush1.bf16.msra.mxu0 %v4880_v9  ;;  %2516 = vmatprep.subr.bf16.mxu1 %v4887_v5  ;;  %v4945_v9 = vcombine.high %v928_v0, %v932_v1  ;;  %v935_v5 = vld [vmem:[#allocation5 + $0x6d0] sm:$0xff]  ;;  %v5432_v1 = vld [vmem:[#allocation7 + $0x48] ss:$16 sps:$4 sm:$0xff]  }
 0x286   :  { %2602 = vmatprep.subr.bf16.mxu0 %v4889_v6  ;;  %v939_v6 = vld [vmem:[#allocation5 + $0x6f0] sm:$0xff] }
 0x287   :  { %v4950_v23 = vcombine.low %v935_v5, %v939_v6  ;;  %v5429_v0 = vld [vmem:[#allocation7 + $0x40] ss:$16 sps:$4 sm:$0xff]  }
 0x288   :  { %2517 = vmatpush1.bf16.msra.mxu1 %v4886_v17  ;;  %v4951_v17 = vcombine.high %v935_v5, %v939_v6  ;;  %v5446_v5 = vld [vmem:[#allocation7 + $0x8c] ss:$16 sps:$4 sm:$0xff]   ;;  %v5441_v6 = vld [vmem:[#allocation7 + $0x80] ss:$16 sps:$4 sm:$0xff]  }
 0x289   :  { %2603 = vmatpush1.bf16.msra.mxu0 %v4888_v13  ;;  %2518 = vmatprep.subr.bf16.mxu1 %v4895_v19  ;;  %v4953_v13 = vcombine.high %v936_v7, %v940_v8  ;;  %v943_v19 = vld [vmem:[#allocation5 + $0x710] sm:$0xff]  ;;  %v5444_v7 = vld [vmem:[#allocation7 + $0x88] ss:$16 sps:$4 sm:$0xff]  }
 0x28a   :  { %2604 = vmatprep.subr.bf16.mxu0 %v4897_v20  ;;  %v947_v20 = vld [vmem:[#allocation5 + $0x730] sm:$0xff] }
 0x28b   :  { %v4958_v31 = vcombine.low %v943_v19, %v947_v20  ;;  %v5449_v8 = vld [vmem:[#allocation7 + $0xa4] ss:$16 sps:$4 sm:$0xff]  }
 0x28c   :  { %2519 = vmatpush1.bf16.msra.mxu1 %v4894_v25  ;;  %v4959_v25 = vcombine.high %v943_v19, %v947_v20  ;;  %v5458_v19 = vld [vmem:[#allocation7 + $0xcc] ss:$16 sps:$4 sm:$0xff]   ;;  %v5453_v20 = vld [vmem:[#allocation7 + $0xc0] ss:$16 sps:$4 sm:$0xff]  }
 0x28d   :  { %2605 = vmatpush1.bf16.msra.mxu0 %v4896_v26  ;;  %2520 = vmatprep.subr.bf16.mxu1 %v4903_v27  ;;  %v4961_v26 = vcombine.high %v944_v21, %v948_v22  ;;  %v951_v27 = vld [vmem:[#allocation5 + $0x750] sm:$0xff]  ;;  %v5456_v21 = vld [vmem:[#allocation7 + $0xc8] ss:$16 sps:$4 sm:$0xff]  }
 0x28e   :  { %2606 = vmatprep.subr.bf16.mxu0 %v4905_v28  ;;  %v955_v28 = vld [vmem:[#allocation5 + $0x770] sm:$0xff] }
 0x28f   :  { %v4966_v39 = vcombine.low %v951_v27, %v955_v28  ;;  %v5461_v22 = vld [vmem:[#allocation7 + $0xe4] ss:$16 sps:$4 sm:$0xff]  }
 0x290   :  { %2521 = vmatpush1.bf16.msra.mxu1 %v4902_v33  ;;  %v4967_v33 = vcombine.high %v951_v27, %v955_v28  ;;  %v5470_v27 = vld [vmem:[#allocation7 + $0x10c] ss:$16 sps:$4 sm:$0xff]   ;;  %v5465_v28 = vld [vmem:[#allocation7 + $0x100] ss:$16 sps:$4 sm:$0xff]  }
 0x291   :  { %2607 = vmatpush1.bf16.msra.mxu0 %v4904_v34  ;;  %2522 = vmatprep.subr.bf16.mxu1 %v4911_v35  ;;  %v4969_v34 = vcombine.high %v952_v29, %v956_v30  ;;  %v959_v35 = vld [vmem:[#allocation5 + $0x790] sm:$0xff]  ;;  %v5468_v29 = vld [vmem:[#allocation7 + $0x108] ss:$16 sps:$4 sm:$0xff]  }
 0x292   :  { %2608 = vmatprep.subr.bf16.mxu0 %v4913_v36  ;;  %v963_v36 = vld [vmem:[#allocation5 + $0x7b0] sm:$0xff] }
 0x293   :  { %v4974_v49 = vcombine.low %v959_v35, %v963_v36  ;;  %v5473_v30 = vld [vmem:[#allocation7 + $0x124] ss:$16 sps:$4 sm:$0xff]  }
 0x294   :  { %2523 = vmatpush1.bf16.msra.mxu1 %v4910_v42  ;;  %v4975_v42 = vcombine.high %v959_v35, %v963_v36  ;;  %v5482_v35 = vld [vmem:[#allocation7 + $0x14c] ss:$16 sps:$4 sm:$0xff]   ;;  %v5477_v36 = vld [vmem:[#allocation7 + $0x140] ss:$16 sps:$4 sm:$0xff]  }
 0x295   :  { %2609 = vmatpush1.bf16.msra.mxu0 %v4912_v44  ;;  %2524 = vmatprep.subr.bf16.mxu1 %v4919_v45  ;;  %v4977_v44 = vcombine.high %v960_v37, %v964_v38  ;;  %v967_v45 = vld [vmem:[#allocation5 + $0x7d0] sm:$0xff]  ;;  %v5480_v37 = vld [vmem:[#allocation7 + $0x148] ss:$16 sps:$4 sm:$0xff]  }
 0x296   :  { %2610 = vmatprep.subr.bf16.mxu0 %v4921_v46  ;;  %v971_v46 = vld [vmem:[#allocation5 + $0x7f0] sm:$0xff] }
 0x297   :  { %v5485_v38 = vld [vmem:[#allocation7 + $0x164] ss:$16 sps:$4 sm:$0xff]  }
 0x298   :  { %2525 = vmatpush1.bf16.msra.mxu1 %v4918_v51  ;;  %v4983_v51 = vcombine.high %v967_v45, %v971_v46 }
 0x299   :  { %2611 = vmatpush1.bf16.msra.mxu0 %v4920_v52  ;;  %2526 = vmatprep.subr.bf16.mxu1 %v4927_v53  ;;  %v4985_v52 = vcombine.high %v968_v47, %v972_v48  ;;  %v4982_v53 = vcombine.low %v967_v45, %v971_v46  ;;  %v5494_v45 = vld [vmem:[#allocation7 + $0x18c] ss:$16 sps:$4 sm:$0xff]   ;;  %v5489_v46 = vld [vmem:[#allocation7 + $0x180] ss:$16 sps:$4 sm:$0xff]  }
 0x29a   :  { %2612 = vmatprep.subr.bf16.mxu0 %v4929_v54  ;;  %v4984_v54 = vcombine.low %v968_v47, %v972_v48  ;;  %v5492_v47 = vld [vmem:[#allocation7 + $0x188] ss:$16 sps:$4 sm:$0xff]   ;;  %v5497_v48 = vld [vmem:[#allocation7 + $0x1a4] ss:$16 sps:$4 sm:$0xff]  }
 0x29c   :  { %2527 = vmatpush1.bf16.msra.mxu1 %v4926_v14  ;;  %v5425_v14 = vld [vmem:[#allocation7 + $0x24] ss:$16 sps:$4 sm:$0xff]  }
 0x29d   :  { %2613 = vmatpush1.bf16.msra.mxu0 %v4928_v59  ;;  %2528 = vmatprep.subr.bf16.mxu1 %v4935_v60  ;;  %v5428_v59 = vld [vmem:[#allocation7 + $0x2c] ss:$16 sps:$4 sm:$0xff]   ;;  %v5423_v60 = vld [vmem:[#allocation7 + $0x20] ss:$16 sps:$4 sm:$0xff]  }
 0x29e   :  { %2614 = vmatprep.subr.bf16.mxu0 %v4937_v61  ;;  %v5426_v61 = vld [vmem:[#allocation7 + $0x28] ss:$16 sps:$4 sm:$0xff]  }
 0x2a0   :  { %2529 = vmatpush1.bf16.msra.mxu1 %v4934_v2  ;;  %v5437_v2 = vld [vmem:[#allocation7 + $0x64] ss:$16 sps:$4 sm:$0xff]  }
 0x2a1   :  { %2615 = vmatpush1.bf16.msra.mxu0 %v4936_v3  ;;  %2530 = vmatprep.subr.bf16.mxu1 %v4943_v4  ;;  %v5440_v3 = vld [vmem:[#allocation7 + $0x6c] ss:$16 sps:$4 sm:$0xff]   ;;  %v5435_v4 = vld [vmem:[#allocation7 + $0x60] ss:$16 sps:$4 sm:$0xff]  }
 0x2a2   :  { %2616 = vmatprep.subr.bf16.mxu0 %v4945_v9  ;;  %v5443_v9 = vld [vmem:[#allocation7 + $0x84] ss:$16 sps:$4 sm:$0xff]  }
 0x2a4   :  { %2531 = vmatpush1.bf16.msra.mxu1 %v4942_v11  ;;  %v5452_v11 = vld [vmem:[#allocation7 + $0xac] ss:$16 sps:$4 sm:$0xff]  }
 0x2a5   :  { %2617 = vmatpush1.bf16.msra.mxu0 %v4944_v12  ;;  %2532 = vmatprep.subr.bf16.mxu1 %v4951_v17  ;;  %v5447_v12 = vld [vmem:[#allocation7 + $0xa0] ss:$16 sps:$4 sm:$0xff]   ;;  %v5450_v17 = vld [vmem:[#allocation7 + $0xa8] ss:$16 sps:$4 sm:$0xff]  }
 0x2a6   :  { %2618 = vmatprep.subr.bf16.mxu0 %v4953_v13  ;;  %v5455_v13 = vld [vmem:[#allocation7 + $0xc4] ss:$16 sps:$4 sm:$0xff]  }
 0x2a8   :  { %2533 = vmatpush1.bf16.msra.mxu1 %v4950_v23  ;;  %v5464_v23 = vld [vmem:[#allocation7 + $0xec] ss:$16 sps:$4 sm:$0xff]  }
 0x2a9   :  { %2619 = vmatpush1.bf16.msra.mxu0 %v4952_v24  ;;  %2534 = vmatprep.subr.bf16.mxu1 %v4959_v25  ;;  %v5459_v24 = vld [vmem:[#allocation7 + $0xe0] ss:$16 sps:$4 sm:$0xff]   ;;  %v5462_v25 = vld [vmem:[#allocation7 + $0xe8] ss:$16 sps:$4 sm:$0xff]  }
 0x2aa   :  { %2620 = vmatprep.subr.bf16.mxu0 %v4961_v26  ;;  %v5467_v26 = vld [vmem:[#allocation7 + $0x104] ss:$16 sps:$4 sm:$0xff]  }
 0x2ac   :  { %2535 = vmatpush1.bf16.msra.mxu1 %v4958_v31  ;;  %v5476_v31 = vld [vmem:[#allocation7 + $0x12c] ss:$16 sps:$4 sm:$0xff]  }
 0x2ad   :  { %2621 = vmatpush1.bf16.msra.mxu0 %v4960_v32  ;;  %2536 = vmatprep.subr.bf16.mxu1 %v4967_v33  ;;  %v5471_v32 = vld [vmem:[#allocation7 + $0x120] ss:$16 sps:$4 sm:$0xff]   ;;  %v5474_v33 = vld [vmem:[#allocation7 + $0x128] ss:$16 sps:$4 sm:$0xff]  }
 0x2ae   :  { %2622 = vmatprep.subr.bf16.mxu0 %v4969_v34  ;;  %v5479_v34 = vld [vmem:[#allocation7 + $0x144] ss:$16 sps:$4 sm:$0xff]  }
 0x2b0   :  { %2537 = vmatpush1.bf16.msra.mxu1 %v4966_v39  ;;  %v5488_v39 = vld [vmem:[#allocation7 + $0x16c] ss:$16 sps:$4 sm:$0xff]  }
 0x2b1   :  { %2623 = vmatpush1.bf16.msra.mxu0 %v4968_v40  ;;  %2538 = vmatprep.subr.bf16.mxu1 %v4975_v42  ;;  %v5483_v40 = vld [vmem:[#allocation7 + $0x160] ss:$16 sps:$4 sm:$0xff]   ;;  %v5486_v42 = vld [vmem:[#allocation7 + $0x168] ss:$16 sps:$4 sm:$0xff]  }
 0x2b2   :  { %2624 = vmatprep.subr.bf16.mxu0 %v4977_v44  ;;  %v5491_v44 = vld [vmem:[#allocation7 + $0x184] ss:$16 sps:$4 sm:$0xff]  }
 0x2b4   :  { %2539 = vmatpush1.bf16.msra.mxu1 %v4974_v49  ;;  %v5500_v49 = vld [vmem:[#allocation7 + $0x1ac] ss:$16 sps:$4 sm:$0xff]  }
 0x2b5   :  { %2625 = vmatpush1.bf16.msra.mxu0 %v4976_v50  ;;  %2540 = vmatprep.subr.bf16.mxu1 %v4983_v51  ;;  %v5495_v50 = vld [vmem:[#allocation7 + $0x1a0] ss:$16 sps:$4 sm:$0xff]   ;;  %v5498_v51 = vld [vmem:[#allocation7 + $0x1a8] ss:$16 sps:$4 sm:$0xff]  }
 0x2b6   :  { %2626 = vmatprep.subr.bf16.mxu0 %v4985_v52  ;;  %v5503_v52 = vld [vmem:[#allocation7 + $0x1c4] ss:$16 sps:$4 sm:$0xff]  }
 0x2b8   :  { %2541 = vmatpush1.bf16.msra.mxu1 %v4982_v53  ;;  %v5506_v53 = vld [vmem:[#allocation7 + $0x1cc] ss:$16 sps:$4 sm:$0xff]  }
 0x2b9   :  { %2627 = vmatpush1.bf16.msra.mxu0 %v4984_v54  ;;  %4237 = vmatprep.subr.bf16.mxu1 %v5419_v55  ;;  %v5501_v54 = vld [vmem:[#allocation7 + $0x1c0] ss:$16 sps:$4 sm:$0xff]   ;;  %v5504_v55 = vld [vmem:[#allocation7 + $0x1c8] ss:$16 sps:$4 sm:$0xff]  }
 0x2ba   :  { %4409 = vmatprep.subr.bf16.mxu0 %v5422_v56  ;;  %v5509_v56 = vld [vmem:[#allocation7 + $0x1e4] ss:$16 sps:$4 sm:$0xff]  }
 0x2bb   :  { %2543 = vmatmul.mubr.bf16.vlgmr.msra.gmra.mrb[8].mxu1 %v6040_v10 }
 0x2bc   :  { %2629 = vmatmul.mubr.bf16.vlgmr.msra.gmra.mrb[12].mxu0 %v6040_v10  ;;  %4238 = vmatpush1.bf16.msra.mxu1 %v5417_v57  ;;  %v5438_v10 = vld [vmem:[#allocation7 + $0x68] ss:$16 sps:$4 sm:$0xff]   ;;  %v5512_v57 = vld [vmem:[#allocation7 + $0x1ec] ss:$16 sps:$4 sm:$0xff]  }
 0x2bd   :  { %4410 = vmatpush1.bf16.msra.mxu0 %v5420_v58  ;;  %4239 = vmatprep.subr.bf16.mxu1 %v5425_v14  ;;  %v5507_v58 = vld [vmem:[#allocation7 + $0x1e0] ss:$16 sps:$4 sm:$0xff]   ;;  %v5510_v14 = vld [vmem:[#allocation7 + $0x1e8] ss:$16 sps:$4 sm:$0xff]  }
 0x2be   :  { %4411 = vmatprep.subr.bf16.mxu0 %v5428_v59  ;;  %v5515_v59 = vld [vmem:[#allocation7 + $0x204] ss:$16 sps:$4 sm:$0xff]  }
 0x2c0   :  { %4240 = vmatpush1.bf16.msra.mxu1 %v5423_v60  ;;  %v5518_v60 = vld [vmem:[#allocation7 + $0x20c] ss:$16 sps:$4 sm:$0xff]  }
 0x2c1   :  { %4412 = vmatpush1.bf16.msra.mxu0 %v5426_v61  ;;  %4241 = vmatprep.subr.bf16.mxu1 %v5431_v62  ;;  %v6065_v61 = vld [vmem:[%s6128_s6] sm:$0xff] }
 0x2c2   :  { %4413 = vmatprep.subr.bf16.mxu0 %v5434_v63  ;;  %v978_v62 = vrot.slane %v6065_v61, %v6015_v16  ;;  %v986_v63 = vrot.slane %v6065_v61, %v6026_v41 }
 0x2c4   :  { %4242 = vmatpush1.bf16.msra.mxu1 %v5429_v0  ;;  %v982_v0 = vrot.slane %v6065_v61, %v6021_v18 }
 0x2c5   :  { %4414 = vmatpush1.bf16.msra.mxu0 %v5432_v1  ;;  %4243 = vmatprep.subr.bf16.mxu1 %v5437_v2  ;;  %v990_v1 = vrot.slane %v6065_v61, %v6032_v43 }
 0x2c6   :  { %4415 = vmatprep.subr.bf16.mxu0 %v5440_v3 }
 0x2c8   :  { %4244 = vmatpush1.bf16.msra.mxu1 %v5435_v4 }
 0x2c9   :  { %4416 = vmatpush1.bf16.msra.mxu0 %v5438_v10  ;;  %4245 = vmatprep.subr.bf16.mxu1 %v5443_v9 }
 0x2ca   :  { %4417 = vmatprep.subr.bf16.mxu0 %v5446_v5 }
 0x2cc   :  { %4246 = vmatpush1.bf16.msra.mxu1 %v5441_v6 }
 0x2cd   :  { %4418 = vmatpush1.bf16.msra.mxu0 %v5444_v7  ;;  %4247 = vmatprep.subr.bf16.mxu1 %v5449_v8 }
 0x2ce   :  { %4419 = vmatprep.subr.bf16.mxu0 %v5452_v11 }
 0x2d0   :  { %4248 = vmatpush1.bf16.msra.mxu1 %v5447_v12 }
 0x2d1   :  { %4420 = vmatpush1.bf16.msra.mxu0 %v5450_v17  ;;  %4249 = vmatprep.subr.bf16.mxu1 %v5455_v13 }
 0x2d2   :  { %4421 = vmatprep.subr.bf16.mxu0 %v5458_v19 }
 0x2d4   :  { %4250 = vmatpush1.bf16.msra.mxu1 %v5453_v20 }
 0x2d5   :  { %4422 = vmatpush1.bf16.msra.mxu0 %v5456_v21  ;;  %4251 = vmatprep.subr.bf16.mxu1 %v5461_v22 }
 0x2d6   :  { %4423 = vmatprep.subr.bf16.mxu0 %v5464_v23 }
 0x2d8   :  { %4252 = vmatpush1.bf16.msra.mxu1 %v5459_v24 }
 0x2d9   :  { %4424 = vmatpush1.bf16.msra.mxu0 %v5462_v25  ;;  %4253 = vmatprep.subr.bf16.mxu1 %v5467_v26 }
 0x2da   :  { %4425 = vmatprep.subr.bf16.mxu0 %v5470_v27 }
 0x2dc   :  { %4254 = vmatpush1.bf16.msra.mxu1 %v5465_v28 }
 0x2dd   :  { %4426 = vmatpush1.bf16.msra.mxu0 %v5468_v29  ;;  %4255 = vmatprep.subr.bf16.mxu1 %v5473_v30 }
 0x2de   :  { %4427 = vmatprep.subr.bf16.mxu0 %v5476_v31 }
 0x2e0   :  { %4256 = vmatpush1.bf16.msra.mxu1 %v5471_v32 }
 0x2e1   :  { %4428 = vmatpush1.bf16.msra.mxu0 %v5474_v33  ;;  %4257 = vmatprep.subr.bf16.mxu1 %v5479_v34  ;;  %v5513_v34 = vld [vmem:[#allocation7 + $0x200] ss:$16 sps:$4 sm:$0xff]  }
 0x2e2   :  { %4429 = vmatprep.subr.bf16.mxu0 %v5482_v35  ;;  %v5516_v35 = vld [vmem:[#allocation7 + $0x208] ss:$16 sps:$4 sm:$0xff]  }
 0x2e4   :  { %4258 = vmatpush1.bf16.msra.mxu1 %v5477_v36  ;;  %v5521_v36 = vld [vmem:[#allocation7 + $0x224] ss:$16 sps:$4 sm:$0xff]  }
 0x2e5   :  { %4430 = vmatpush1.bf16.msra.mxu0 %v5480_v37  ;;  %4259 = vmatprep.subr.bf16.mxu1 %v5485_v38  ;;  %v5524_v37 = vld [vmem:[#allocation7 + $0x22c] ss:$16 sps:$4 sm:$0xff]   ;;  %v5519_v38 = vld [vmem:[#allocation7 + $0x220] ss:$16 sps:$4 sm:$0xff]  }
 0x2e6   :  { %4431 = vmatprep.subr.bf16.mxu0 %v5488_v39  ;;  %v5522_v39 = vld [vmem:[#allocation7 + $0x228] ss:$16 sps:$4 sm:$0xff]  }
 0x2e8   :  { %4260 = vmatpush1.bf16.msra.mxu1 %v5483_v40  ;;  %v5527_v40 = vld [vmem:[#allocation7 + $0x244] ss:$16 sps:$4 sm:$0xff]  }
 0x2e9   :  { %4432 = vmatpush1.bf16.msra.mxu0 %v5486_v42  ;;  %4261 = vmatprep.subr.bf16.mxu1 %v5491_v44  ;;  %v5530_v42 = vld [vmem:[#allocation7 + $0x24c] ss:$16 sps:$4 sm:$0xff]   ;;  %v5525_v44 = vld [vmem:[#allocation7 + $0x240] ss:$16 sps:$4 sm:$0xff]  }
 0x2ea   :  { %4433 = vmatprep.subr.bf16.mxu0 %v5494_v45  ;;  %v5528_v45 = vld [vmem:[#allocation7 + $0x248] ss:$16 sps:$4 sm:$0xff]  }
 0x2ec   :  { %4262 = vmatpush1.bf16.msra.mxu1 %v5489_v46  ;;  %v5533_v46 = vld [vmem:[#allocation7 + $0x264] ss:$16 sps:$4 sm:$0xff]  }
 0x2ed   :  { %4434 = vmatpush1.bf16.msra.mxu0 %v5492_v47  ;;  %4263 = vmatprep.subr.bf16.mxu1 %v5497_v48  ;;  %v5536_v47 = vld [vmem:[#allocation7 + $0x26c] ss:$16 sps:$4 sm:$0xff]   ;;  %v5531_v48 = vld [vmem:[#allocation7 + $0x260] ss:$16 sps:$4 sm:$0xff]  }
 0x2ee   :  { %4435 = vmatprep.subr.bf16.mxu0 %v5500_v49  ;;  %v5534_v49 = vld [vmem:[#allocation7 + $0x268] ss:$16 sps:$4 sm:$0xff]  }
 0x2f0   :  { %4264 = vmatpush1.bf16.msra.mxu1 %v5495_v50  ;;  %v5539_v50 = vld [vmem:[#allocation7 + $0x284] ss:$16 sps:$4 sm:$0xff]  }
 0x2f1   :  { %4436 = vmatpush1.bf16.msra.mxu0 %v5498_v51  ;;  %4265 = vmatprep.subr.bf16.mxu1 %v5503_v52  ;;  %v5542_v51 = vld [vmem:[#allocation7 + $0x28c] ss:$16 sps:$4 sm:$0xff]   ;;  %v5537_v52 = vld [vmem:[#allocation7 + $0x280] ss:$16 sps:$4 sm:$0xff]  }
 0x2f2   :  { %4437 = vmatprep.subr.bf16.mxu0 %v5506_v53  ;;  %v5540_v53 = vld [vmem:[#allocation7 + $0x288] ss:$16 sps:$4 sm:$0xff]  }
 0x2f4   :  { %4266 = vmatpush1.bf16.msra.mxu1 %v5501_v54  ;;  %v5545_v54 = vld [vmem:[#allocation7 + $0x2a4] ss:$16 sps:$4 sm:$0xff]  }
 0x2f5   :  { %4438 = vmatpush1.bf16.msra.mxu0 %v5504_v55  ;;  %4267 = vmatprep.subr.bf16.mxu1 %v5509_v56  ;;  %v5548_v55 = vld [vmem:[#allocation7 + $0x2ac] ss:$16 sps:$4 sm:$0xff]   ;;  %v5543_v56 = vld [vmem:[#allocation7 + $0x2a0] ss:$16 sps:$4 sm:$0xff]  }
 0x2f6   :  { %4439 = vmatprep.subr.bf16.mxu0 %v5512_v57  ;;  %v5546_v57 = vld [vmem:[#allocation7 + $0x2a8] ss:$16 sps:$4 sm:$0xff]  }
 0x2f8   :  { %4268 = vmatpush1.bf16.msra.mxu1 %v5507_v58  ;;  %v5551_v58 = vld [vmem:[#allocation7 + $0x2c4] ss:$16 sps:$4 sm:$0xff]  }
 0x2f9   :  { %4440 = vmatpush1.bf16.msra.mxu0 %v5510_v14  ;;  %4280 = vmatprep.subr.bf16.mxu1 %v5515_v59  ;;  %v5554_v14 = vld [vmem:[#allocation7 + $0x2cc] ss:$16 sps:$4 sm:$0xff]   ;;  %v5549_v59 = vld [vmem:[#allocation7 + $0x2c0] ss:$16 sps:$4 sm:$0xff]  }
 0x2fa   :  { %4452 = vmatprep.subr.bf16.mxu0 %v5518_v60  ;;  %v5552_v60 = vld [vmem:[#allocation7 + $0x2c8] ss:$16 sps:$4 sm:$0xff]  }
 0x30e   :  { %v2372_v2 = vpop.f32.mrb[4].mxu1  ;;  %v2458_v3 = vpop.f32.mrb[8].mxu0 }
 0x30f   :  { %v5242_v4 = vadd.f32 %v2372_v2, %v978_v62  ;;  %v5246_v10 = vadd.f32 %v2458_v3, %v986_v63  ;;  %v2374_v9 = vpop.f32.mrb[5].mxu1  ;;  %v2460_v5 = vpop.f32.mrb[9].mxu0  ;;  %v5563_v2 = vld [vmem:[#allocation7 + $0x304] ss:$16 sps:$4 sm:$0xff]   ;;  %v5566_v3 = vld [vmem:[#allocation7 + $0x30c] ss:$16 sps:$4 sm:$0xff]  }
 0x310   :  { %v5243_v6 = vadd.f32 %v2374_v9, %v982_v0  ;;  %v5247_v7 = vadd.f32 %v2460_v5, %v990_v1  ;;  %v2376_v8 = vpop.f32.mrb[6].mxu1  ;;  %v2462_v11 = vpop.f32.mrb[10].mxu0  ;;  %v5569_v9 = vld [vmem:[#allocation7 + $0x324] ss:$16 sps:$4 sm:$0xff]   ;;  %v5572_v5 = vld [vmem:[#allocation7 + $0x32c] ss:$16 sps:$4 sm:$0xff]  }
 0x311   :  { %v5244_v12 = vadd.f32 %v2376_v8, %v978_v62  ;;  %v5248_v17 = vadd.f32 %v2462_v11, %v986_v63  ;;  %v2378_v13 = vpop.f32.mrb[7].mxu1  ;;  %v2464_v19 = vpop.f32.mrb[11].mxu0  ;;  %v2639_v22 = vmax.f32 %v5242_v4, 0.0  ;;  %v2641_v23 = vmax.f32 %v5246_v10, 0.0  ;;  %v5557_v62 = vld [vmem:[#allocation7 + $0x2e4] ss:$16 sps:$4 sm:$0xff]  }
 0x312   :  { %v5245_v20 = vadd.f32 %v2378_v13, %v982_v0  ;;  %v5249_v21 = vadd.f32 %v2464_v19, %v990_v1  ;;  %v2640_v26 = vmax.f32 %v5243_v6, 0.0  ;;  %v2642_v27 = vmax.f32 %v5247_v7, 0.0  ;;  %v5560_v63 = vld [vmem:[#allocation7 + $0x2ec] ss:$16 sps:$4 sm:$0xff]   ;;  %v5555_v0 = vld [vmem:[#allocation7 + $0x2e0] ss:$16 sps:$4 sm:$0xff]  }
 0x313   :  { %v2647_v24 = vmax.f32 %v5244_v12, 0.0  ;;  %v2649_v25 = vmax.f32 %v5248_v17, 0.0  ;;  %v5558_v1 = vld [vmem:[#allocation7 + $0x2e8] ss:$16 sps:$4 sm:$0xff]   ;;  %v5561_v4 = vld [vmem:[#allocation7 + $0x300] ss:$16 sps:$4 sm:$0xff]  }
 0x314   :  { %v2648_v28 = vmax.f32 %v5245_v20, 0.0  ;;  %v2650_v29 = vmax.f32 %v5249_v21, 0.0  ;;  %v5564_v10 = vld [vmem:[#allocation7 + $0x308] ss:$16 sps:$4 sm:$0xff]   ;;  %v5567_v6 = vld [vmem:[#allocation7 + $0x320] ss:$16 sps:$4 sm:$0xff]  }
 0x315   :  { %v2655_v30 = vpack.c.bf16 %v2647_v24, %v2639_v22  ;;  %v6075_v31 = vpack.c.bf16 %v2649_v25, %v2641_v23  ;;  %v5570_v7 = vld [vmem:[#allocation7 + $0x328] ss:$16 sps:$4 sm:$0xff]   ;;  %v5575_v8 = vld [vmem:[#allocation7 + $0x344] ss:$16 sps:$4 sm:$0xff]   ;;  %v5578_v11 = vld [vmem:[#allocation7 + $0x34c] ss:$16 sps:$4 sm:$0xff]  }
 0x316   :  { %v2656_v32 = vpack.c.bf16 %v2648_v28, %v2640_v26  ;;  %v2658_v33 = vpack.c.bf16 %v2650_v29, %v2642_v27  ;;  %v5573_v12 = vld [vmem:[#allocation7 + $0x340] ss:$16 sps:$4 sm:$0xff]   ;;  %v5576_v17 = vld [vmem:[#allocation7 + $0x348] ss:$16 sps:$4 sm:$0xff]   ;;  %v5581_v13 = vld [vmem:[#allocation7 + $0x364] ss:$16 sps:$4 sm:$0xff]  }
 0x317   :  { %v5584_v19 = vld [vmem:[#allocation7 + $0x36c] ss:$16 sps:$4 sm:$0xff]   ;;  %v5579_v20 = vld [vmem:[#allocation7 + $0x360] ss:$16 sps:$4 sm:$0xff]   ;;  %v5582_v21 = vld [vmem:[#allocation7 + $0x368] ss:$16 sps:$4 sm:$0xff]  }
 0x318   :  { %4269 = vmatprep.mubr.bf16.mxu1 %v2656_v32  ;;  %4441 = vmatprep.mubr.bf16.mxu0 %v2656_v32  ;;  %v5587_v22 = vld [vmem:[#allocation7 + $0x384] ss:$16 sps:$4 sm:$0xff]   ;;  %v5590_v23 = vld [vmem:[#allocation7 + $0x38c] ss:$16 sps:$4 sm:$0xff]   ;;  %v5585_v24 = vld [vmem:[#allocation7 + $0x380] ss:$16 sps:$4 sm:$0xff]  }
 0x319   :  { %4270 = vmatmul.mubr.bf16.vlgmr.msra.gmra.mrb[12].mxu1 %v2655_v30  ;;  %4442 = vmatmul.mubr.bf16.vlgmr.msra.gmra.mrb[16].mxu0 %v2655_v30  ;;  %v5588_v25 = vld [vmem:[#allocation7 + $0x388] ss:$16 sps:$4 sm:$0xff]   ;;  %v5593_v26 = vld [vmem:[#allocation7 + $0x3a4] ss:$16 sps:$4 sm:$0xff]   ;;  %v5596_v27 = vld [vmem:[#allocation7 + $0x3ac] ss:$16 sps:$4 sm:$0xff]  }
 0x31a   :  { %4281 = vmatpush1.bf16.msra.mxu1 %v5513_v34  ;;  %4453 = vmatpush1.bf16.msra.mxu0 %v5516_v35  ;;  %v5591_v28 = vld [vmem:[#allocation7 + $0x3a0] ss:$16 sps:$4 sm:$0xff]   ;;  %v5594_v29 = vld [vmem:[#allocation7 + $0x3a8] ss:$16 sps:$4 sm:$0xff]   ;;  %v5599_v30 = vld [vmem:[#allocation7 + $0x3c4] ss:$16 sps:$4 sm:$0xff]  }
 0x31b   :  { %4312 = vmatprep.mubr.bf16.mxu1 %v2658_v33  ;;  %4484 = vmatprep.mubr.bf16.mxu0 %v2658_v33  ;;  %v5602_v32 = vld [vmem:[#allocation7 + $0x3cc] ss:$16 sps:$4 sm:$0xff]   ;;  %v5597_v33 = vld [vmem:[#allocation7 + $0x3c0] ss:$16 sps:$4 sm:$0xff]   ;;  %v5600_v34 = vld [vmem:[#allocation7 + $0x3c8] ss:$16 sps:$4 sm:$0xff]  }
 0x31c   :  { %4282 = vmatprep.subr.bf16.mxu1 %v5521_v36  ;;  %4454 = vmatprep.subr.bf16.mxu0 %v5524_v37  ;;  %v5605_v35 = vld [vmem:[#allocation7 + $0x3e4] ss:$16 sps:$4 sm:$0xff]   ;;  %v5608_v36 = vld [vmem:[#allocation7 + $0x3ec] ss:$16 sps:$4 sm:$0xff]   ;;  %v5603_v37 = vld [vmem:[#allocation7 + $0x3e0] ss:$16 sps:$4 sm:$0xff]  }
 0x31e   :  { %4283 = vmatpush1.bf16.msra.mxu1 %v5519_v38  ;;  %4455 = vmatpush1.bf16.msra.mxu0 %v5522_v39  ;;  %v5606_v38 = vld [vmem:[#allocation7 + $0x3e8] ss:$16 sps:$4 sm:$0xff]   ;;  %v5611_v39 = vld [vmem:[#allocation7 + $0x404] ss:$16 sps:$4 sm:$0xff]  }
 0x31f   :  { %4284 = vmatprep.subr.bf16.mxu1 %v5527_v40  ;;  %4456 = vmatprep.subr.bf16.mxu0 %v5530_v42  ;;  %v5614_v40 = vld [vmem:[#allocation7 + $0x40c] ss:$16 sps:$4 sm:$0xff]   ;;  %v5609_v42 = vld [vmem:[#allocation7 + $0x400] ss:$16 sps:$4 sm:$0xff]  }
 0x322   :  { %4285 = vmatpush1.bf16.msra.mxu1 %v5525_v44  ;;  %4457 = vmatpush1.bf16.msra.mxu0 %v5528_v45  ;;  %v5612_v44 = vld [vmem:[#allocation7 + $0x408] ss:$16 sps:$4 sm:$0xff]   ;;  %v5617_v45 = vld [vmem:[#allocation7 + $0x424] ss:$16 sps:$4 sm:$0xff]  }
 0x323   :  { %4286 = vmatprep.subr.bf16.mxu1 %v5533_v46  ;;  %4458 = vmatprep.subr.bf16.mxu0 %v5536_v47  ;;  %v5620_v46 = vld [vmem:[#allocation7 + $0x42c] ss:$16 sps:$4 sm:$0xff]   ;;  %v5615_v47 = vld [vmem:[#allocation7 + $0x420] ss:$16 sps:$4 sm:$0xff]  }
 0x326   :  { %4287 = vmatpush1.bf16.msra.mxu1 %v5531_v48  ;;  %4459 = vmatpush1.bf16.msra.mxu0 %v5534_v49  ;;  %v5618_v48 = vld [vmem:[#allocation7 + $0x428] ss:$16 sps:$4 sm:$0xff]   ;;  %v5623_v49 = vld [vmem:[#allocation7 + $0x444] ss:$16 sps:$4 sm:$0xff]  }
 0x327   :  { %4288 = vmatprep.subr.bf16.mxu1 %v5539_v50  ;;  %4460 = vmatprep.subr.bf16.mxu0 %v5542_v51  ;;  %v5626_v50 = vld [vmem:[#allocation7 + $0x44c] ss:$16 sps:$4 sm:$0xff]   ;;  %v5621_v51 = vld [vmem:[#allocation7 + $0x440] ss:$16 sps:$4 sm:$0xff]  }
 0x32a   :  { %4289 = vmatpush1.bf16.msra.mxu1 %v5537_v52  ;;  %4461 = vmatpush1.bf16.msra.mxu0 %v5540_v53  ;;  %v5624_v52 = vld [vmem:[#allocation7 + $0x448] ss:$16 sps:$4 sm:$0xff]   ;;  %v5629_v53 = vld [vmem:[#allocation7 + $0x464] ss:$16 sps:$4 sm:$0xff]  }
 0x32b   :  { %4290 = vmatprep.subr.bf16.mxu1 %v5545_v54  ;;  %4462 = vmatprep.subr.bf16.mxu0 %v5548_v55  ;;  %v5632_v54 = vld [vmem:[#allocation7 + $0x46c] ss:$16 sps:$4 sm:$0xff]   ;;  %v5627_v55 = vld [vmem:[#allocation7 + $0x460] ss:$16 sps:$4 sm:$0xff]  }
 0x32e   :  { %4291 = vmatpush1.bf16.msra.mxu1 %v5543_v56  ;;  %4463 = vmatpush1.bf16.msra.mxu0 %v5546_v57  ;;  %v5635_v56 = vld [vmem:[#allocation7 + $0x484] ss:$16 sps:$4 sm:$0xff]   ;;  %v5638_v57 = vld [vmem:[#allocation7 + $0x48c] ss:$16 sps:$4 sm:$0xff]  }
 0x32f   :  { %4292 = vmatprep.subr.bf16.mxu1 %v5551_v58  ;;  %4464 = vmatprep.subr.bf16.mxu0 %v5554_v14  ;;  %v5633_v58 = vld [vmem:[#allocation7 + $0x480] ss:$16 sps:$4 sm:$0xff]   ;;  %v5636_v14 = vld [vmem:[#allocation7 + $0x488] ss:$16 sps:$4 sm:$0xff]  }
 0x332   :  { %4293 = vmatpush1.bf16.msra.mxu1 %v5549_v59  ;;  %4465 = vmatpush1.bf16.msra.mxu0 %v5552_v60  ;;  %v5641_v59 = vld [vmem:[#allocation7 + $0x4a4] ss:$16 sps:$4 sm:$0xff]   ;;  %v5644_v60 = vld [vmem:[#allocation7 + $0x4ac] ss:$16 sps:$4 sm:$0xff]  }
 0x333   :  { %4294 = vmatprep.subr.bf16.mxu1 %v5557_v62  ;;  %4466 = vmatprep.subr.bf16.mxu0 %v5560_v63  ;;  %v5639_v62 = vld [vmem:[#allocation7 + $0x4a0] ss:$16 sps:$4 sm:$0xff]   ;;  %v5642_v63 = vld [vmem:[#allocation7 + $0x4a8] ss:$16 sps:$4 sm:$0xff]  }
 0x336   :  { %4295 = vmatpush1.bf16.msra.mxu1 %v5555_v0  ;;  %4467 = vmatpush1.bf16.msra.mxu0 %v5558_v1  ;;  %v5647_v0 = vld [vmem:[#allocation7 + $0x4c4] ss:$16 sps:$4 sm:$0xff]   ;;  %v5650_v1 = vld [vmem:[#allocation7 + $0x4cc] ss:$16 sps:$4 sm:$0xff]  }
 0x337   :  { %4296 = vmatprep.subr.bf16.mxu1 %v5563_v2  ;;  %4468 = vmatprep.subr.bf16.mxu0 %v5566_v3  ;;  %v5645_v2 = vld [vmem:[#allocation7 + $0x4c0] ss:$16 sps:$4 sm:$0xff]   ;;  %v5648_v3 = vld [vmem:[#allocation7 + $0x4c8] ss:$16 sps:$4 sm:$0xff]  }
 0x33a   :  { %4297 = vmatpush1.bf16.msra.mxu1 %v5561_v4  ;;  %4469 = vmatpush1.bf16.msra.mxu0 %v5564_v10  ;;  %v5653_v4 = vld [vmem:[#allocation7 + $0x4e4] ss:$16 sps:$4 sm:$0xff]   ;;  %v5656_v10 = vld [vmem:[#allocation7 + $0x4ec] ss:$16 sps:$4 sm:$0xff]  }
 0x33b   :  { %4298 = vmatprep.subr.bf16.mxu1 %v5569_v9  ;;  %4470 = vmatprep.subr.bf16.mxu0 %v5572_v5  ;;  %v5651_v9 = vld [vmem:[#allocation7 + $0x4e0] ss:$16 sps:$4 sm:$0xff]   ;;  %v5654_v5 = vld [vmem:[#allocation7 + $0x4e8] ss:$16 sps:$4 sm:$0xff]  }
 0x33e   :  { %4299 = vmatpush1.bf16.msra.mxu1 %v5567_v6  ;;  %4471 = vmatpush1.bf16.msra.mxu0 %v5570_v7  ;;  %v5659_v6 = vld [vmem:[#allocation7 + $0x504] ss:$16 sps:$4 sm:$0xff]   ;;  %v5662_v7 = vld [vmem:[#allocation7 + $0x50c] ss:$16 sps:$4 sm:$0xff]  }
 0x33f   :  { %4300 = vmatprep.subr.bf16.mxu1 %v5575_v8  ;;  %4472 = vmatprep.subr.bf16.mxu0 %v5578_v11  ;;  %v5657_v8 = vld [vmem:[#allocation7 + $0x500] ss:$16 sps:$4 sm:$0xff]   ;;  %v5660_v11 = vld [vmem:[#allocation7 + $0x508] ss:$16 sps:$4 sm:$0xff]  }
 0x342   :  { %4301 = vmatpush1.bf16.msra.mxu1 %v5573_v12  ;;  %4473 = vmatpush1.bf16.msra.mxu0 %v5576_v17  ;;  %v5665_v12 = vld [vmem:[#allocation7 + $0x524] ss:$16 sps:$4 sm:$0xff]   ;;  %v5668_v17 = vld [vmem:[#allocation7 + $0x52c] ss:$16 sps:$4 sm:$0xff]  }
 0x343   :  { %4302 = vmatprep.subr.bf16.mxu1 %v5581_v13  ;;  %4474 = vmatprep.subr.bf16.mxu0 %v5584_v19  ;;  %v5663_v13 = vld [vmem:[#allocation7 + $0x520] ss:$16 sps:$4 sm:$0xff]   ;;  %v5666_v19 = vld [vmem:[#allocation7 + $0x528] ss:$16 sps:$4 sm:$0xff]  }
 0x346   :  { %4303 = vmatpush1.bf16.msra.mxu1 %v5579_v20  ;;  %4475 = vmatpush1.bf16.msra.mxu0 %v5582_v21  ;;  %v5671_v20 = vld [vmem:[#allocation7 + $0x544] ss:$16 sps:$4 sm:$0xff]   ;;  %v5674_v21 = vld [vmem:[#allocation7 + $0x54c] ss:$16 sps:$4 sm:$0xff]  }
 0x347   :  { %4304 = vmatprep.subr.bf16.mxu1 %v5587_v22  ;;  %4476 = vmatprep.subr.bf16.mxu0 %v5590_v23  ;;  %v5669_v22 = vld [vmem:[#allocation7 + $0x540] ss:$16 sps:$4 sm:$0xff]   ;;  %v5672_v23 = vld [vmem:[#allocation7 + $0x548] ss:$16 sps:$4 sm:$0xff]  }
 0x34a   :  { %4305 = vmatpush1.bf16.msra.mxu1 %v5585_v24  ;;  %4477 = vmatpush1.bf16.msra.mxu0 %v5588_v25  ;;  %v5677_v24 = vld [vmem:[#allocation7 + $0x564] ss:$16 sps:$4 sm:$0xff]   ;;  %v5680_v25 = vld [vmem:[#allocation7 + $0x56c] ss:$16 sps:$4 sm:$0xff]  }
 0x34b   :  { %4306 = vmatprep.subr.bf16.mxu1 %v5593_v26  ;;  %4478 = vmatprep.subr.bf16.mxu0 %v5596_v27  ;;  %v5675_v26 = vld [vmem:[#allocation7 + $0x560] ss:$16 sps:$4 sm:$0xff]   ;;  %v5678_v27 = vld [vmem:[#allocation7 + $0x568] ss:$16 sps:$4 sm:$0xff]  }
 0x34e   :  { %4307 = vmatpush1.bf16.msra.mxu1 %v5591_v28  ;;  %4479 = vmatpush1.bf16.msra.mxu0 %v5594_v29  ;;  %v5683_v28 = vld [vmem:[#allocation7 + $0x584] ss:$16 sps:$4 sm:$0xff]   ;;  %v5686_v29 = vld [vmem:[#allocation7 + $0x58c] ss:$16 sps:$4 sm:$0xff]  }
 0x34f   :  { %4308 = vmatprep.subr.bf16.mxu1 %v5599_v30  ;;  %4480 = vmatprep.subr.bf16.mxu0 %v5602_v32  ;;  %v5681_v30 = vld [vmem:[#allocation7 + $0x580] ss:$16 sps:$4 sm:$0xff]   ;;  %v5684_v32 = vld [vmem:[#allocation7 + $0x588] ss:$16 sps:$4 sm:$0xff]  }
 0x352   :  { %4309 = vmatpush1.bf16.msra.mxu1 %v5597_v33  ;;  %4481 = vmatpush1.bf16.msra.mxu0 %v5600_v34  ;;  %v5689_v33 = vld [vmem:[#allocation7 + $0x5a4] ss:$16 sps:$4 sm:$0xff]   ;;  %v5692_v34 = vld [vmem:[#allocation7 + $0x5ac] ss:$16 sps:$4 sm:$0xff]  }
 0x353   :  { %4310 = vmatprep.subr.bf16.mxu1 %v5605_v35  ;;  %4482 = vmatprep.subr.bf16.mxu0 %v5608_v36  ;;  %v993_v35 = vsub.s32 4, %v6012_v15  ;;  %v1001_v36 = vsub.s32 6, %v6012_v15 }
 0x356   :  { %4311 = vmatpush1.bf16.msra.mxu1 %v5603_v37  ;;  %4483 = vmatpush1.bf16.msra.mxu0 %v5606_v38  ;;  %v997_v37 = vsub.s32 5, %v6012_v15  ;;  %v1005_v38 = vsub.s32 7, %v6012_v15  ;;  %v5693_v15 = vld [vmem:[#allocation7 + $0x5c0] ss:$16 sps:$4 sm:$0xff]  }
 0x357   :  { %4323 = vmatprep.subr.bf16.mxu1 %v5611_v39  ;;  %4495 = vmatprep.subr.bf16.mxu0 %v5614_v40  ;;  %v5687_v39 = vld [vmem:[#allocation7 + $0x5a0] ss:$16 sps:$4 sm:$0xff]   ;;  %v5690_v40 = vld [vmem:[#allocation7 + $0x5a8] ss:$16 sps:$4 sm:$0xff]  }
 0x359   :  { %4313 = vmatmul.mubr.bf16.vlgmr.msra.gmra.mrb[12].mxu1 %v6075_v31  ;;  %4485 = vmatmul.mubr.bf16.vlgmr.msra.gmra.mrb[16].mxu0 %v6075_v31  ;;  %v5630_v31 = vld [vmem:[#allocation7 + $0x468] ss:$16 sps:$4 sm:$0xff]  }
 0x35a   :  { %4324 = vmatpush1.bf16.msra.mxu1 %v5609_v42  ;;  %4496 = vmatpush1.bf16.msra.mxu0 %v5612_v44  ;;  %v994_v42 = vrot.slane %v6065_v61, %v993_v35  ;;  %v5695_v44 = vld [vmem:[#allocation7 + $0x5c4] ss:$16 sps:$4 sm:$0xff]   ;;  %v5723_v35 = vld [vmem:[#allocation7 + $0x660] ss:$16 sps:$4 sm:$0xff]  }
 0x35b   :  { %4325 = vmatprep.subr.bf16.mxu1 %v5617_v45  ;;  %4497 = vmatprep.subr.bf16.mxu0 %v5620_v46  ;;  %v5698_v45 = vld [vmem:[#allocation7 + $0x5cc] ss:$16 sps:$4 sm:$0xff]   ;;  %v1002_v46 = vrot.slane %v6065_v61, %v1001_v36  ;;  %v5726_v36 = vld [vmem:[#allocation7 + $0x668] ss:$16 sps:$4 sm:$0xff]  }
 0x35e   :  { %4326 = vmatpush1.bf16.msra.mxu1 %v5615_v47  ;;  %4498 = vmatpush1.bf16.msra.mxu0 %v5618_v48  ;;  %v998_v47 = vrot.slane %v6065_v61, %v997_v37  ;;  %v1006_v48 = vrot.slane %v6065_v61, %v1005_v38  ;;  %v5731_v37 = vld [vmem:[#allocation7 + $0x684] ss:$16 sps:$4 sm:$0xff]   ;;  %v5734_v38 = vld [vmem:[#allocation7 + $0x68c] ss:$16 sps:$4 sm:$0xff]  }
 0x35f   :  { %4327 = vmatprep.subr.bf16.mxu1 %v5623_v49  ;;  %4499 = vmatprep.subr.bf16.mxu0 %v5626_v50  ;;  %v5696_v50 = vld [vmem:[#allocation7 + $0x5c8] ss:$16 sps:$4 sm:$0xff]  }
 0x362   :  { %4328 = vmatpush1.bf16.msra.mxu1 %v5621_v51  ;;  %4500 = vmatpush1.bf16.msra.mxu0 %v5624_v52 }
 0x363   :  { %4329 = vmatprep.subr.bf16.mxu1 %v5629_v53  ;;  %4501 = vmatprep.subr.bf16.mxu0 %v5632_v54  ;;  %v5701_v54 = vld [vmem:[#allocation7 + $0x5e4] ss:$16 sps:$4 sm:$0xff]  }
 0x366   :  { %4330 = vmatpush1.bf16.msra.mxu1 %v5627_v55  ;;  %4502 = vmatpush1.bf16.msra.mxu0 %v5630_v31  ;;  %v5704_v55 = vld [vmem:[#allocation7 + $0x5ec] ss:$16 sps:$4 sm:$0xff]  }
 0x367   :  { %4331 = vmatprep.subr.bf16.mxu1 %v5635_v56  ;;  %4503 = vmatprep.subr.bf16.mxu0 %v5638_v57 }
 0x36a   :  { %4332 = vmatpush1.bf16.msra.mxu1 %v5633_v58  ;;  %4504 = vmatpush1.bf16.msra.mxu0 %v5636_v14 }
 0x36b   :  { %4333 = vmatprep.subr.bf16.mxu1 %v5641_v59  ;;  %4505 = vmatprep.subr.bf16.mxu0 %v5644_v60 }
 0x36e   :  { %4334 = vmatpush1.bf16.msra.mxu1 %v5639_v62  ;;  %4506 = vmatpush1.bf16.msra.mxu0 %v5642_v63 }
 0x36f   :  { %4335 = vmatprep.subr.bf16.mxu1 %v5647_v0  ;;  %4507 = vmatprep.subr.bf16.mxu0 %v5650_v1  ;;  %v5699_v1 = vld [vmem:[#allocation7 + $0x5e0] ss:$16 sps:$4 sm:$0xff]  }
 0x372   :  { %4336 = vmatpush1.bf16.msra.mxu1 %v5645_v2  ;;  %4508 = vmatpush1.bf16.msra.mxu0 %v5648_v3  ;;  %v5702_v2 = vld [vmem:[#allocation7 + $0x5e8] ss:$16 sps:$4 sm:$0xff]  }
 0x373   :  { %4337 = vmatprep.subr.bf16.mxu1 %v5653_v4  ;;  %4509 = vmatprep.subr.bf16.mxu0 %v5656_v10 }
 0x376   :  { %4338 = vmatpush1.bf16.msra.mxu1 %v5651_v9  ;;  %4510 = vmatpush1.bf16.msra.mxu0 %v5654_v5  ;;  %v5707_v9 = vld [vmem:[#allocation7 + $0x604] ss:$16 sps:$4 sm:$0xff]   ;;  %v5710_v5 = vld [vmem:[#allocation7 + $0x60c] ss:$16 sps:$4 sm:$0xff]  }
 0x377   :  { %4339 = vmatprep.subr.bf16.mxu1 %v5659_v6  ;;  %4511 = vmatprep.subr.bf16.mxu0 %v5662_v7 }
 0x37a   :  { %4340 = vmatpush1.bf16.msra.mxu1 %v5657_v8  ;;  %4512 = vmatpush1.bf16.msra.mxu0 %v5660_v11 }
 0x37b   :  { %4341 = vmatprep.subr.bf16.mxu1 %v5665_v12  ;;  %4513 = vmatprep.subr.bf16.mxu0 %v5668_v17 }
 0x37e   :  { %4342 = vmatpush1.bf16.msra.mxu1 %v5663_v13  ;;  %4514 = vmatpush1.bf16.msra.mxu0 %v5666_v19 }
 0x37f   :  { %4343 = vmatprep.subr.bf16.mxu1 %v5671_v20  ;;  %4515 = vmatprep.subr.bf16.mxu0 %v5674_v21  ;;  %v5705_v21 = vld [vmem:[#allocation7 + $0x600] ss:$16 sps:$4 sm:$0xff]  }
 0x382   :  { %4344 = vmatpush1.bf16.msra.mxu1 %v5669_v22  ;;  %4516 = vmatpush1.bf16.msra.mxu0 %v5672_v23  ;;  %v5708_v22 = vld [vmem:[#allocation7 + $0x608] ss:$16 sps:$4 sm:$0xff]  }
 0x383   :  { %4345 = vmatprep.subr.bf16.mxu1 %v5677_v24  ;;  %4517 = vmatprep.subr.bf16.mxu0 %v5680_v25  ;;  %v5713_v24 = vld [vmem:[#allocation7 + $0x624] ss:$16 sps:$4 sm:$0xff]   ;;  %v5716_v25 = vld [vmem:[#allocation7 + $0x62c] ss:$16 sps:$4 sm:$0xff]  }
 0x386   :  { %4346 = vmatpush1.bf16.msra.mxu1 %v5675_v26  ;;  %4518 = vmatpush1.bf16.msra.mxu0 %v5678_v27  ;;  %v5711_v26 = vld [vmem:[#allocation7 + $0x620] ss:$16 sps:$4 sm:$0xff]   ;;  %v5714_v27 = vld [vmem:[#allocation7 + $0x628] ss:$16 sps:$4 sm:$0xff]  }
 0x387   :  { %4347 = vmatprep.subr.bf16.mxu1 %v5683_v28  ;;  %4519 = vmatprep.subr.bf16.mxu0 %v5686_v29  ;;  %v5719_v28 = vld [vmem:[#allocation7 + $0x644] ss:$16 sps:$4 sm:$0xff]   ;;  %v5722_v29 = vld [vmem:[#allocation7 + $0x64c] ss:$16 sps:$4 sm:$0xff]  }
 0x38a   :  { %4348 = vmatpush1.bf16.msra.mxu1 %v5681_v30  ;;  %4520 = vmatpush1.bf16.msra.mxu0 %v5684_v32  ;;  %v5717_v30 = vld [vmem:[#allocation7 + $0x640] ss:$16 sps:$4 sm:$0xff]   ;;  %v5720_v32 = vld [vmem:[#allocation7 + $0x648] ss:$16 sps:$4 sm:$0xff]  }
 0x38b   :  { %4349 = vmatprep.subr.bf16.mxu1 %v5689_v33  ;;  %4521 = vmatprep.subr.bf16.mxu0 %v5692_v34  ;;  %v5725_v33 = vld [vmem:[#allocation7 + $0x664] ss:$16 sps:$4 sm:$0xff]   ;;  %v5728_v34 = vld [vmem:[#allocation7 + $0x66c] ss:$16 sps:$4 sm:$0xff]  }
 0x38e   :  { %4350 = vmatpush1.bf16.msra.mxu1 %v5687_v39  ;;  %4522 = vmatpush1.bf16.msra.mxu0 %v5690_v40  ;;  %v2544_v49 = vpop.f32.mrb[8].mxu1  ;;  %v5729_v39 = vld [vmem:[#allocation7 + $0x680] ss:$16 sps:$4 sm:$0xff]   ;;  %v5732_v40 = vld [vmem:[#allocation7 + $0x688] ss:$16 sps:$4 sm:$0xff]  }
 0x38f   :  { %v5250_v51 = vadd.f32 %v2544_v49, %v994_v42  ;;  %v2630_v52 = vpop.f32.mrb[12].mxu0  ;;  %v2546_v53 = vpop.f32.mrb[9].mxu1  ;;  %4351 = vmatprep.subr.bf16.mxu1 %v5695_v44  ;;  %4523 = vmatprep.subr.bf16.mxu0 %v5698_v45  ;;  %v5740_v44 = vld [vmem:[#allocation7 + $0x6ac] ss:$16 sps:$4 sm:$0xff]   ;;  %v5735_v45 = vld [vmem:[#allocation7 + $0x6a0] ss:$16 sps:$4 sm:$0xff]  }
 0x390   :  { %v5254_v31 = vadd.f32 %v2630_v52, %v1002_v46  ;;  %v5251_v56 = vadd.f32 %v2546_v53, %v998_v47  ;;  %v2632_v57 = vpop.f32.mrb[13].mxu0  ;;  %v2548_v58 = vpop.f32.mrb[10].mxu1  ;;  %v5741_v49 = vld [vmem:[#allocation7 + $0x6c0] ss:$16 sps:$4 sm:$0xff]   ;;  %v5750_v53 = vld [vmem:[#allocation7 + $0x6e8] ss:$16 sps:$4 sm:$0xff]  }
 0x391   :  { %v5255_v14 = vadd.f32 %v2632_v57, %v1006_v48  ;;  %v5252_v59 = vadd.f32 %v2548_v58, %v994_v42  ;;  %v2634_v60 = vpop.f32.mrb[14].mxu0  ;;  %v2550_v61 = vpop.f32.mrb[11].mxu1  ;;  %v2643_v3 = vmax.f32 %v5250_v51, 0.0  ;;  %v5737_v42 = vld [vmem:[#allocation7 + $0x6a4] ss:$16 sps:$4 sm:$0xff]  }
 0x392   :  { %v5256_v62 = vadd.f32 %v2634_v60, %v1002_v46  ;;  %v5253_v63 = vadd.f32 %v2550_v61, %v998_v47  ;;  %v2636_v0 = vpop.f32.mrb[15].mxu0  ;;  %4352 = vmatpush1.bf16.msra.mxu1 %v5693_v15  ;;  %4524 = vmatpush1.bf16.msra.mxu0 %v5696_v50  ;;  %v2645_v6 = vmax.f32 %v5254_v31, 0.0  ;;  %v2644_v7 = vmax.f32 %v5251_v56, 0.0  ;;  %v5738_v46 = vld [vmem:[#allocation7 + $0x6a8] ss:$16 sps:$4 sm:$0xff]  }
 0x393   :  { %v2651_v4 = vmax.f32 %v5252_v59, 0.0  ;;  %v5257_v10 = vadd.f32 %v2636_v0, %v1006_v48  ;;  %4353 = vmatprep.subr.bf16.mxu1 %v5701_v54  ;;  %4525 = vmatprep.subr.bf16.mxu0 %v5704_v55  ;;  %v2646_v12 = vmax.f32 %v5255_v14, 0.0  ;;  %v5743_v47 = vld [vmem:[#allocation7 + $0x6c4] ss:$16 sps:$4 sm:$0xff]   ;;  %v5746_v48 = vld [vmem:[#allocation7 + $0x6cc] ss:$16 sps:$4 sm:$0xff]  }
 0x394   :  { %v2653_v8 = vmax.f32 %v5256_v62, 0.0  ;;  %v2652_v11 = vmax.f32 %v5253_v63, 0.0  ;;  %v5744_v15 = vld [vmem:[#allocation7 + $0x6c8] ss:$16 sps:$4 sm:$0xff]   ;;  %v5749_v50 = vld [vmem:[#allocation7 + $0x6e4] ss:$16 sps:$4 sm:$0xff]  }
 0x395   :  { %v2659_v17 = vpack.c.bf16 %v2651_v4, %v2643_v3  ;;  %v2654_v13 = vmax.f32 %v5257_v10, 0.0  ;;  %v5752_v51 = vld [vmem:[#allocation7 + $0x6ec] ss:$16 sps:$4 sm:$0xff]   ;;  %v5747_v52 = vld [vmem:[#allocation7 + $0x6e0] ss:$16 sps:$4 sm:$0xff]  }
 0x396   :  { %v6087_v19 = vpack.c.bf16 %v2653_v8, %v2645_v6  ;;  %v2660_v20 = vpack.c.bf16 %v2652_v11, %v2644_v7  ;;  %4354 = vmatpush1.bf16.msra.mxu1 %v5699_v1  ;;  %4526 = vmatpush1.bf16.msra.mxu0 %v5702_v2  ;;  %v5755_v54 = vld [vmem:[#allocation7 + $0x704] ss:$16 sps:$4 sm:$0xff]   ;;  %v5758_v55 = vld [vmem:[#allocation7 + $0x70c] ss:$16 sps:$4 sm:$0xff]   ;;  %v5753_v31 = vld [vmem:[#allocation7 + $0x700] ss:$16 sps:$4 sm:$0xff]  }
 0x397   :  { %v2662_v23 = vpack.c.bf16 %v2654_v13, %v2646_v12  ;;  %4366 = vmatprep.subr.bf16.mxu1 %v5707_v9  ;;  %4538 = vmatprep.subr.bf16.mxu0 %v5710_v5  ;;  %v5756_v56 = vld [vmem:[#allocation7 + $0x708] ss:$16 sps:$4 sm:$0xff]   ;;  %v5761_v57 = vld [vmem:[#allocation7 + $0x724] ss:$16 sps:$4 sm:$0xff]   ;;  %v5764_v58 = vld [vmem:[#allocation7 + $0x72c] ss:$16 sps:$4 sm:$0xff]  }
 0x398   :  { %4355 = vmatprep.mubr.bf16.mxu1 %v2660_v20  ;;  %4527 = vmatprep.mubr.bf16.mxu0 %v2660_v20  ;;  %v5759_v14 = vld [vmem:[#allocation7 + $0x720] ss:$16 sps:$4 sm:$0xff]   ;;  %v5762_v59 = vld [vmem:[#allocation7 + $0x728] ss:$16 sps:$4 sm:$0xff]   ;;  %v5767_v60 = vld [vmem:[#allocation7 + $0x744] ss:$16 sps:$4 sm:$0xff]  }
 0x399   :  { %4356 = vmatmul.mubr.bf16.vlgmr.msra.gmra.mrb[12].mxu1 %v2659_v17  ;;  %4528 = vmatmul.mubr.bf16.vlgmr.msra.gmra.mrb[16].mxu0 %v2659_v17  ;;  %v5770_v61 = vld [vmem:[#allocation7 + $0x74c] ss:$16 sps:$4 sm:$0xff]   ;;  %v5765_v62 = vld [vmem:[#allocation7 + $0x740] ss:$16 sps:$4 sm:$0xff]   ;;  %v5768_v63 = vld [vmem:[#allocation7 + $0x748] ss:$16 sps:$4 sm:$0xff]  }
 0x39a   :  { %4367 = vmatpush1.bf16.msra.mxu1 %v5705_v21  ;;  %4539 = vmatpush1.bf16.msra.mxu0 %v5708_v22  ;;  %v5773_v0 = vld [vmem:[#allocation7 + $0x764] ss:$16 sps:$4 sm:$0xff]   ;;  %v5776_v1 = vld [vmem:[#allocation7 + $0x76c] ss:$16 sps:$4 sm:$0xff]   ;;  %v5771_v2 = vld [vmem:[#allocation7 + $0x760] ss:$16 sps:$4 sm:$0xff]  }
 0x39b   :  { %4398 = vmatprep.mubr.bf16.mxu1 %v2662_v23  ;;  %4570 = vmatprep.mubr.bf16.mxu0 %v2662_v23  ;;  %v5774_v3 = vld [vmem:[#allocation7 + $0x768] ss:$16 sps:$4 sm:$0xff]   ;;  %v5779_v4 = vld [vmem:[#allocation7 + $0x784] ss:$16 sps:$4 sm:$0xff]   ;;  %v5782_v10 = vld [vmem:[#allocation7 + $0x78c] ss:$16 sps:$4 sm:$0xff]  }
 0x39c   :  { %4368 = vmatprep.subr.bf16.mxu1 %v5713_v24  ;;  %4540 = vmatprep.subr.bf16.mxu0 %v5716_v25  ;;  %v5777_v9 = vld [vmem:[#allocation7 + $0x780] ss:$16 sps:$4 sm:$0xff]   ;;  %v5780_v5 = vld [vmem:[#allocation7 + $0x788] ss:$16 sps:$4 sm:$0xff]   ;;  %v5785_v6 = vld [vmem:[#allocation7 + $0x7a4] ss:$16 sps:$4 sm:$0xff]  }
 0x39d   :  { %v5788_v7 = vld [vmem:[#allocation7 + $0x7ac] ss:$16 sps:$4 sm:$0xff]   ;;  %v5783_v8 = vld [vmem:[#allocation7 + $0x7a0] ss:$16 sps:$4 sm:$0xff]   ;;  %v5786_v11 = vld [vmem:[#allocation7 + $0x7a8] ss:$16 sps:$4 sm:$0xff]  }
 0x39e   :  { %4369 = vmatpush1.bf16.msra.mxu1 %v5711_v26  ;;  %4541 = vmatpush1.bf16.msra.mxu0 %v5714_v27  ;;  %v5791_v12 = vld [vmem:[#allocation7 + $0x7c4] ss:$16 sps:$4 sm:$0xff]   ;;  %v5794_v17 = vld [vmem:[#allocation7 + $0x7cc] ss:$16 sps:$4 sm:$0xff]   ;;  %v5789_v13 = vld [vmem:[#allocation7 + $0x7c0] ss:$16 sps:$4 sm:$0xff]  }
 0x39f   :  { %4370 = vmatprep.subr.bf16.mxu1 %v5719_v28  ;;  %4542 = vmatprep.subr.bf16.mxu0 %v5722_v29  ;;  %v5792_v20 = vld [vmem:[#allocation7 + $0x7c8] ss:$16 sps:$4 sm:$0xff]   ;;  %v5797_v21 = vld [vmem:[#allocation7 + $0x7e4] ss:$16 sps:$4 sm:$0xff]   ;;  %v5800_v22 = vld [vmem:[#allocation7 + $0x7ec] ss:$16 sps:$4 sm:$0xff]  }
 0x3a0   :  { %v5795_v23 = vld [vmem:[#allocation7 + $0x7e0] ss:$16 sps:$4 sm:$0xff]   ;;  %v5798_v24 = vld [vmem:[#allocation7 + $0x7e8] ss:$16 sps:$4 sm:$0xff]  }
 0x3a1   :  { %v2935_v25 = vld [vmem:[%s6130_s8] sm:$0xf] }
 0x3a2   :  { %4371 = vmatpush1.bf16.msra.mxu1 %v5717_v30  ;;  %4543 = vmatpush1.bf16.msra.mxu0 %v5720_v32  ;;  %v2940_v26 = vrot.slane %v2935_v25, %v6015_v16  ;;  %v2948_v27 = vrot.slane %v2935_v25, %v6026_v41  ;;  %v2944_v28 = vrot.slane %v2935_v25, %v6021_v18 }
 0x3a3   :  { %4372 = vmatprep.subr.bf16.mxu1 %v5725_v33  ;;  %4544 = vmatprep.subr.bf16.mxu0 %v5728_v34  ;;  %v2952_v29 = vrot.slane %v2935_v25, %v6032_v43 }
 0x3a6   :  { %4373 = vmatpush1.bf16.msra.mxu1 %v5723_v35  ;;  %4545 = vmatpush1.bf16.msra.mxu0 %v5726_v36 }
 0x3a7   :  { %4374 = vmatprep.subr.bf16.mxu1 %v5731_v37  ;;  %4546 = vmatprep.subr.bf16.mxu0 %v5734_v38 }
 0x3aa   :  { %4375 = vmatpush1.bf16.msra.mxu1 %v5729_v39  ;;  %4547 = vmatpush1.bf16.msra.mxu0 %v5732_v40 }
 0x3ab   :  { %4376 = vmatprep.subr.bf16.mxu1 %v5737_v42  ;;  %4548 = vmatprep.subr.bf16.mxu0 %v5740_v44 }
 0x3ae   :  { %4377 = vmatpush1.bf16.msra.mxu1 %v5735_v45  ;;  %4549 = vmatpush1.bf16.msra.mxu0 %v5738_v46 }
 0x3af   :  { %4378 = vmatprep.subr.bf16.mxu1 %v5743_v47  ;;  %4550 = vmatprep.subr.bf16.mxu0 %v5746_v48 }
 0x3b2   :  { %4379 = vmatpush1.bf16.msra.mxu1 %v5741_v49  ;;  %4551 = vmatpush1.bf16.msra.mxu0 %v5744_v15 }
 0x3b3   :  { %4380 = vmatprep.subr.bf16.mxu1 %v5749_v50  ;;  %4552 = vmatprep.subr.bf16.mxu0 %v5752_v51 }
 0x3b6   :  { %4381 = vmatpush1.bf16.msra.mxu1 %v5747_v52  ;;  %4553 = vmatpush1.bf16.msra.mxu0 %v5750_v53 }
 0x3b7   :  { %4382 = vmatprep.subr.bf16.mxu1 %v5755_v54  ;;  %4554 = vmatprep.subr.bf16.mxu0 %v5758_v55 }
 0x3ba   :  { %4383 = vmatpush1.bf16.msra.mxu1 %v5753_v31  ;;  %4555 = vmatpush1.bf16.msra.mxu0 %v5756_v56 }
 0x3bb   :  { %4384 = vmatprep.subr.bf16.mxu1 %v5761_v57  ;;  %4556 = vmatprep.subr.bf16.mxu0 %v5764_v58 }
 0x3be   :  { %4385 = vmatpush1.bf16.msra.mxu1 %v5759_v14  ;;  %4557 = vmatpush1.bf16.msra.mxu0 %v5762_v59 }
 0x3bf   :  { %4386 = vmatprep.subr.bf16.mxu1 %v5767_v60  ;;  %4558 = vmatprep.subr.bf16.mxu0 %v5770_v61 }
 0x3c2   :  { %4387 = vmatpush1.bf16.msra.mxu1 %v5765_v62  ;;  %4559 = vmatpush1.bf16.msra.mxu0 %v5768_v63 }
 0x3c3   :  { %4388 = vmatprep.subr.bf16.mxu1 %v5773_v0  ;;  %4560 = vmatprep.subr.bf16.mxu0 %v5776_v1 }
 0x3c6   :  { %4389 = vmatpush1.bf16.msra.mxu1 %v5771_v2  ;;  %4561 = vmatpush1.bf16.msra.mxu0 %v5774_v3 }
 0x3c7   :  { %4390 = vmatprep.subr.bf16.mxu1 %v5779_v4  ;;  %4562 = vmatprep.subr.bf16.mxu0 %v5782_v10 }
 0x3ca   :  { %4391 = vmatpush1.bf16.msra.mxu1 %v5777_v9  ;;  %4563 = vmatpush1.bf16.msra.mxu0 %v5780_v5 }
 0x3cb   :  { %4392 = vmatprep.subr.bf16.mxu1 %v5785_v6  ;;  %4564 = vmatprep.subr.bf16.mxu0 %v5788_v7 }
 0x3ce   :  { %4393 = vmatpush1.bf16.msra.mxu1 %v5783_v8  ;;  %4565 = vmatpush1.bf16.msra.mxu0 %v5786_v11 }
 0x3cf   :  { %4394 = vmatprep.subr.bf16.mxu1 %v5791_v12  ;;  %4566 = vmatprep.subr.bf16.mxu0 %v5794_v17 }
 0x3d2   :  { %4395 = vmatpush1.bf16.msra.mxu1 %v5789_v13  ;;  %4567 = vmatpush1.bf16.msra.mxu0 %v5792_v20 }
 0x3d3   :  { %4396 = vmatprep.subr.bf16.mxu1 %v5797_v21  ;;  %4568 = vmatprep.subr.bf16.mxu0 %v5800_v22 }
 0x3d6   :  { %4397 = vmatpush1.bf16.msra.mxu1 %v5795_v23  ;;  %4569 = vmatpush1.bf16.msra.mxu0 %v5798_v24 }
 0x3d9   :  { %4399 = vmatmul.mubr.bf16.vlgmr.msra.gmra.mrb[12].mxu1 %v6087_v19  ;;  %4571 = vmatmul.mubr.bf16.vlgmr.msra.gmra.mrb[16].mxu0 %v6087_v19 }
 0x4ac   :  { %v4400_v30 = vpop.f32.mrb[12].mxu1  ;;  %v4572_v32 = vpop.f32.mrb[16].mxu0 }
 0x4ad   :  { %v5258_v33 = vadd.f32 %v4400_v30, %v2940_v26  ;;  %v5262_v34 = vadd.f32 %v4572_v32, %v2948_v27  ;;  %v4402_v35 = vpop.f32.mrb[13].mxu1  ;;  %v4574_v36 = vpop.f32.mrb[17].mxu0 }
 0x4ae   :  { %v5259_v37 = vadd.f32 %v4402_v35, %v2944_v28  ;;  %v5263_v19 = vadd.f32 %v4574_v36, %v2952_v29  ;;  %v4404_v38 = vpop.f32.mrb[14].mxu1  ;;  %v4576_v39 = vpop.f32.mrb[18].mxu0 }
 0x4af   :  { %v4581_v40 = vsub.f32 0.0, %v5258_v33  ;;  %v4583_v42 = vsub.f32 0.0, %v5262_v34  ;;  %v5260_v44 = vadd.f32 %v4404_v38, %v2940_v26  ;;  %v5264_v16 = vadd.f32 %v4576_v39, %v2948_v27  ;;  %v4406_v45 = vpop.f32.mrb[15].mxu1  ;;  %v4578_v41 = vpop.f32.mrb[19].mxu0 }
 0x4b0   :  { %v4582_v46 = vsub.f32 0.0, %v5259_v37  ;;  %v4584_v18 = vsub.f32 0.0, %v5263_v19  ;;  %v5261_v47 = vadd.f32 %v4406_v45, %v2944_v28  ;;  %v5265_v43 = vadd.f32 %v4578_v41, %v2952_v29 }
 0x4b1   :  { %v4589_v48 = vmul.f32 1.442695, %v4581_v40  ;;  %v4593_v49 = vmul.f32 1.442695, %v4583_v42  ;;  %v4585_v15 = vsub.f32 0.0, %v5260_v44  ;;  %v4587_v50 = vsub.f32 0.0, %v5264_v16 }
 0x4b2   :  { %v4591_v51 = vmul.f32 1.442695, %v4582_v46  ;;  %v4595_v52 = vmul.f32 1.442695, %v4584_v18  ;;  %v4586_v53 = vsub.f32 0.0, %v5261_v47  ;;  %v4588_v54 = vsub.f32 0.0, %v5265_v43 }
 0x4b3   :  { %5801 = vpow2.f32 %v4589_v48  ;;  %v4597_v55 = vmul.f32 1.442695, %v4585_v15  ;;  %v4601_v31 = vmul.f32 1.442695, %v4587_v50 }
 0x4b4   :  { %5803 = vpow2.f32 %v4593_v49  ;;  %v4599_v56 = vmul.f32 1.442695, %v4586_v53  ;;  %v4603_v57 = vmul.f32 1.442695, %v4588_v54 }
 0x4b5   :  { %5805 = vpow2.f32 %v4591_v51 }
 0x4b6   :  { %5807 = vpow2.f32 %v4595_v52 }
 0x4b7   :  { %5809 = vpow2.f32 %v4597_v55 }
 0x4b8   :  { %5811 = vpow2.f32 %v4601_v31 }
 0x4b9   :  { %5813 = vpow2.f32 %v4599_v56 }
 0x4ba   :  { %5815 = vpow2.f32 %v4603_v57 }
 0x4bd   :  { %v5802_v58 = vpop.eup %5801 }
 0x4be   :  { %v5804_v14 = vpop.eup %5803  ;;  %v4605_v59 = vadd.f32 1.0, %v5802_v58 }
 0x4bf   :  { %v5806_v60 = vpop.eup %5805  ;;  %v4607_v61 = vadd.f32 1.0, %v5804_v14 }
 0x4c0   :  { %v5808_v62 = vpop.eup %5807  ;;  %5817 = vrcp.f32 %v4605_v59  ;;  %v4606_v63 = vadd.f32 1.0, %v5806_v60 }
 0x4c1   :  { %v5810_v0 = vpop.eup %5809  ;;  %5819 = vrcp.f32 %v4607_v61  ;;  %v4608_v1 = vadd.f32 1.0, %v5808_v62 }
 0x4c2   :  { %v5812_v2 = vpop.eup %5811  ;;  %5821 = vrcp.f32 %v4606_v63  ;;  %v4609_v3 = vadd.f32 1.0, %v5810_v0 }
 0x4c3   :  { %v5814_v4 = vpop.eup %5813  ;;  %5823 = vrcp.f32 %v4608_v1  ;;  %v4611_v10 = vadd.f32 1.0, %v5812_v2 }
 0x4c4   :  { %v5816_v9 = vpop.eup %5815  ;;  %5825 = vrcp.f32 %v4609_v3  ;;  %v4610_v5 = vadd.f32 1.0, %v5814_v4 }
 0x4c5   :  { %5827 = vrcp.f32 %v4611_v10  ;;  %v4612_v6 = vadd.f32 1.0, %v5816_v9 }
 0x4c6   :  { %5829 = vrcp.f32 %v4610_v5 }
 0x4c7   :  { %5831 = vrcp.f32 %v4612_v6 }
 0x4ca   :  { %v5818_v7 = vpop.eup %5817 }
 0x4cb   :  { %v5820_v8 = vpop.eup %5819  ;;  %4621 = vst [vmem:[%s6131_s9] sm:$0xff] %v5818_v7 }
 0x4cc   :  { %v5822_v11 = vpop.eup %5821  ;;  %4623 = vst [vmem:[%s6131_s9 + $0x10] sm:$0xff] %v5820_v8 }
 0x4cd   :  { %v5824_v12 = vpop.eup %5823  ;;  %4622 = vst [vmem:[%s6131_s9 + $0x8] sm:$0xff] %v5822_v11 }
 0x4ce   :  { %v5826_v17 = vpop.eup %5825  ;;  %4624 = vst [vmem:[%s6131_s9 + $0x18] sm:$0xff] %v5824_v12 }
 0x4cf   :  { %v5828_v13 = vpop.eup %5827  ;;  %4625 = vst [vmem:[%s6131_s9 + $0x20] sm:$0xff] %v5826_v17 }
 0x4d0   :  { %v5830_v20 = vpop.eup %5829  ;;  %4627 = vst [vmem:[%s6131_s9 + $0x30] sm:$0xff] %v5828_v13 }
 0x4d1   :  { %v5832_v21 = vpop.eup %5831  ;;  %4626 = vst [vmem:[%s6131_s9 + $0x28] sm:$0xff] %v5830_v20 }
 0x4d2   :  { %4628 = vst [vmem:[%s6131_s9 + $0x38] sm:$0xff] %v5832_v21 }
 0x4d3   :  { %4647 = vsyncpa [#allocation4], 1 }
 0x4d4   :  { %4648 = vsyncpa [#allocation6], 1 }

</bundles_post_ra>
